<compile_context>
chip_gen: v6e
topology: v6e:2x2x1
jax: 0.10.0
libtpu: 0.0.40
codegen_flags: <defaults>
</compile_context>

<pallas_src>
import functools
import math

import jax
import jax.numpy as jnp
from jax.experimental import pallas as pl
from jax.experimental.pallas import tpu as pltpu

LN_EPS = 1e-5  # PyTorch nn.LayerNorm default eps


def _mha_kernel(q_ref, k_ref, v_ref, mcol_ref, mrow_ref,
                wq_ref, wk_ref, wv_ref, havg_ref, g1_ref, b1_ref,
                wp_ref, bp_ref, g2_ref, b2_ref,
                out_ref, o_heads_ref,
                *, n_head, d_k, inv_scale, direction, alpha,
                use_dist_mask, mxu_dtype, approx_recip):
    _, L, D = q_ref.shape
    HD = n_head * d_k

    # MXU operands stay in their storage dtype (bf16 on the perf path);
    # every matmul below accumulates in f32 via preferred_element_type.
    q = q_ref[0]                       # (L, D)
    k = k_ref[0]
    v = v_ref[0]
    wq = wq_ref[...]                   # (D, HD) pre-packed per-head weights
    wk = wk_ref[...]
    wv = wv_ref[...]
    wp = wp_ref[...]                   # (HD, D) = proj.weight.T

    m_col = mcol_ref[0]                # (L, 1) f32
    m_row = mrow_ref[0]                # (1, L) f32
    havg = havg_ref[...]               # (HD, HD) block-diag 1/d_k averaging matrix
    g1 = g1_ref[...]                   # (1, HD) LayerNorm(d_k) gamma, tiled per head
    b1 = b1_ref[...]
    bp = bp_ref[...]                   # (1, D)
    g2 = g2_ref[...]                   # (1, D) LayerNorm(d_model) gamma
    b2 = b2_ref[...]

    # --- QKV projections: three dense (L, D) x (D, H*d_k) MXU matmuls -------
    qp = jnp.dot(q, wq, preferred_element_type=jnp.float32)   # (L, HD) f32
    kp = jnp.dot(k, wk, preferred_element_type=jnp.float32)
    vp = jnp.dot(v, wv, preferred_element_type=jnp.float32)

    # --- shared LayerNorm(d_k), all heads at once ----------------------------
    # Per-head mean / variance via a block-diagonal averaging matmul (MXU)
    # instead of 3*H lane-sub-slice reductions; two-pass variance for stability.
    def ln_heads(x):                                           # x: (L, HD) f32
        mu = jnp.dot(x, havg, preferred_element_type=jnp.float32)
        diff = x - mu
        var = jnp.dot(diff * diff, havg, preferred_element_type=jnp.float32)
        return diff * jax.lax.rsqrt(var + LN_EPS) * g1 + b1

    q_b = ln_heads(qp).astype(mxu_dtype)
    k_b = ln_heads(kp).astype(mxu_dtype)
    v_b = ln_heads(vp).astype(mxu_dtype)

    # --- attention mask / distance bias: built once, reused by every head ----
    # NOTE: multiplicative 0/1 masking and the 1/sqrt(d_model) scale are the
    # module's exact semantics (masked_softmax / Attention), NOT standard
    # additive-(-inf) attention with 1/sqrt(d_k) -- do not "fix".
    mask2d = m_col * m_row                                     # (L, L) rep-mask tile
    if (direction is not None) or use_dist_mask:
        row = jax.lax.broadcasted_iota(jnp.int32, (L, L), 0)
        col = jax.lax.broadcasted_iota(jnp.int32, (L, L), 1)
    if direction == 'fw':                                      # tril(ones, -1)
        mask2d = mask2d * (col < row).astype(jnp.float32)
    elif direction == 'bw':                                    # triu(ones, 1)
        mask2d = mask2d * (col > row).astype(jnp.float32)
    dist_bias = None
    if use_dist_mask:
        dist_bias = (-alpha) * jnp.abs(row - col).astype(jnp.float32)  # alpha*(-|i-j|)

    # --- per-head attention; heads concatenated into one (L, HD) scratch -----
    for h in range(n_head):
        lo = h * d_k
        qh = q_b[:, lo:lo + d_k]
        kh = k_b[:, lo:lo + d_k]
        vh = v_b[:, lo:lo + d_k]

        # scores = q_h @ k_h^T / sqrt(d_model)  (transpose folded into dot_general)
        sc = jax.lax.dot_general(qh, kh, (((1,), (1,)), ((), ())),
                                 preferred_element_type=jnp.float32) * inv_scale
        if dist_bias is not None:
            sc = sc + dist_bias

        # masked_softmax(sc, mask, dim=-1) -- exact module semantics
        masked = sc * mask2d
        mx = jnp.max(masked, axis=-1, keepdims=True)
        ex = jnp.exp(masked - mx) * mask2d
        sm = jnp.sum(ex, axis=-1, keepdims=True)
        sm = sm + (sm == 0.0).astype(jnp.float32)
        attn = ex * pl.reciprocal(sm + 1e-20, approx=approx_recip)

        oh = jnp.dot(attn.astype(mxu_dtype), vh,
                     preferred_element_type=jnp.float32)       # (L, d_k) f32
        o_heads_ref[:, lo:lo + d_k] = oh                       # "concat" by columns

    # --- ONE dense (L, HD) x (HD, D) output projection, then LayerNorm(D) ----
    acc = jnp.dot(o_heads_ref[...].astype(mxu_dtype), wp,
                  preferred_element_type=jnp.float32) + bp
    mu2 = jnp.mean(acc, axis=-1, keepdims=True)
    var2 = jnp.mean(jnp.square(acc - mu2), axis=-1, keepdims=True)
    out = (acc - mu2) * jax.lax.rsqrt(var2 + LN_EPS) * g2 + b2
    # nn.Dropout after layer_norm2 is identity in eval mode (not applied here).
    out_ref[0] = out.astype(out_ref.dtype)


def prepare_params(params, n_head, mxu_dtype=jnp.bfloat16):
    """One-time re-layout of the PyTorch parameters into the kernel layout
    (done once, outside the per-call hot path)."""
    H, D, d_k = params['w_qs'].shape
    assert H == n_head
    HD = H * d_k

    def pack(w):   # (H, D, d_k) -> (D, H*d_k); column h*d_k + j == w[h, :, j]
        return jnp.transpose(w, (1, 0, 2)).reshape(D, HD).astype(mxu_dtype)

    # Block-diagonal per-head averaging matrix for the shared LayerNorm(d_k).
    blk = jnp.arange(HD) // d_k
    havg = (blk[:, None] == blk[None, :]).astype(jnp.float32) / float(d_k)

    return {
        'wq': pack(params['w_qs']),
        'wk': pack(params['w_ks']),
        'wv': pack(params['w_vs']),
        'havg': havg,                                                       # (HD, HD) f32
        'ln_g': jnp.tile(params['ln_g'].reshape(1, d_k), (1, H)).astype(jnp.float32),
        'ln_b': jnp.tile(params['ln_b'].reshape(1, d_k), (1, H)).astype(jnp.float32),
        'wp': params['w_proj'].T.astype(mxu_dtype),                         # (HD, D)
        'bp': params['b_proj'].reshape(1, -1).astype(jnp.float32),
        'ln2_g': params['ln2_g'].reshape(1, -1).astype(jnp.float32),
        'ln2_b': params['ln2_b'].reshape(1, -1).astype(jnp.float32),
    }


def multi_head_attention(q, k, v, rep_mask, packed, *, n_head,
                         direction=None, alpha=1.0, use_dist_mask=False,
                         mxu_dtype=jnp.bfloat16):
    """q, k, v: (B, L, D); rep_mask: (B, L, 1) -> output (B, L, D) float32."""
    B, L, D = q.shape
    d_k = D // n_head
    HD = n_head * d_k
    if direction not in (None, 'fw', 'bw'):
        raise ValueError(f"bad direction: {direction}")

    # Ship q/k/v already in the MXU dtype: halves the dominant HBM->VMEM DMA
    # bytes on the bf16 path; they feed matmuls first, so no extra rounding.
    q = q.astype(mxu_dtype)
    k = k.astype(mxu_dtype)
    v = v.astype(mxu_dtype)
    mask_col = rep_mask.astype(jnp.float32)        # (B, L, 1)
    mask_row = mask_col.reshape(B, 1, L)           # (B, 1, L): free re-view

    kernel = functools.partial(
        _mha_kernel, n_head=n_head, d_k=d_k, inv_scale=1.0 / math.sqrt(D),
        direction=direction, alpha=alpha, use_dist_mask=use_dist_mask,
        mxu_dtype=mxu_dtype, approx_recip=(mxu_dtype == jnp.bfloat16))

    batch3 = lambda b: (b, 0, 0)
    inv2 = lambda b: (0, 0)      # grid-invariant operands (weights / LN params)

    return pl.pallas_call(
        kernel,
        out_shape=jax.ShapeDtypeStruct((B, L, D), jnp.float32),
        grid_spec=pltpu.PrefetchScalarGridSpec(
            num_scalar_prefetch=0,
            grid=(B,),
            in_specs=[
                pl.BlockSpec((1, L, D), batch3),     # q
                pl.BlockSpec((1, L, D), batch3),     # k
                pl.BlockSpec((1, L, D), batch3),     # v
                pl.BlockSpec((1, L, 1), batch3),     # rep_mask (column view)
                pl.BlockSpec((1, 1, L), batch3),     # rep_mask (row view)
                pl.BlockSpec((D, HD), inv2),         # packed W_q
                pl.BlockSpec((D, HD), inv2),         # packed W_k
                pl.BlockSpec((D, HD), inv2),         # packed W_v
                pl.BlockSpec((HD, HD), inv2),        # per-head averaging matrix
                pl.BlockSpec((1, HD), inv2),         # LayerNorm(d_k) gamma (tiled)
                pl.BlockSpec((1, HD), inv2),         # LayerNorm(d_k) beta (tiled)
                pl.BlockSpec((HD, D), inv2),         # proj.weight.T
                pl.BlockSpec((1, D), inv2),          # proj.bias
                pl.BlockSpec((1, D), inv2),          # LayerNorm(d_model) gamma
                pl.BlockSpec((1, D), inv2),          # LayerNorm(d_model) beta
            ],
            out_specs=pl.BlockSpec((1, L, D), batch3),
            scratch_shapes=[pltpu.VMEM((L, HD), jnp.float32)],   # concat-heads buffer
        ),
        compiler_params=pltpu.CompilerParams(
            dimension_semantics=("parallel",),        # both v7x TCs get work (B >= 2)
            vmem_limit_bytes=48 * 1024 * 1024),       # > 16/32 MiB defaults, < v7x 64 MiB
    )(q, k, v, mask_col, mask_row,
      packed['wq'], packed['wk'], packed['wv'], packed['havg'],
      packed['ln_g'], packed['ln_b'],
      packed['wp'], packed['bp'], packed['ln2_g'], packed['ln2_b'])


def mha_ref(q, k, v, rep_mask, params, *, n_head,
            direction=None, alpha=1.0, use_dist_mask=False):
    """Pure-JAX reference mirroring the PyTorch MultiHeadAttention.forward exactly."""
    B, L, D = q.shape
    d_k = D // n_head

    def ln(x, g, b):
        mu = jnp.mean(x, axis=-1, keepdims=True)
        var = jnp.mean((x - mu) ** 2, axis=-1, keepdims=True)
        return (x - mu) / jnp.sqrt(var + LN_EPS) * g + b

    # torch: q.repeat(H,1,1).view(H,-1,D) bmm w_qs -> view(H*B, L, d_k); batch idx = h*B + b
    q_s = ln(jnp.einsum('bld,hdk->hblk', q, params['w_qs']).reshape(n_head * B, L, d_k),
             params['ln_g'], params['ln_b'])
    k_s = ln(jnp.einsum('bld,hdk->hblk', k, params['w_ks']).reshape(n_head * B, L, d_k),
             params['ln_g'], params['ln_b'])
    v_s = ln(jnp.einsum('bld,hdk->hblk', v, params['w_vs']).reshape(n_head * B, L, d_k),
             params['ln_g'], params['ln_b'])

    rm = jnp.tile(rep_mask.astype(jnp.float32), (n_head, 1, 1))         # (H*B, L, 1)
    scores = jnp.einsum('nqd,nkd->nqk', q_s, k_s) / math.sqrt(D)
    mask = rm * jnp.swapaxes(rm, 1, 2)                                  # (H*B, L, L)
    if direction == 'fw':
        mask = mask * jnp.tril(jnp.ones((L, L), jnp.float32), -1)[None]
    elif direction == 'bw':
        mask = mask * jnp.triu(jnp.ones((L, L), jnp.float32), 1)[None]
    if use_dist_mask:
        idx = jnp.arange(L)
        scores = scores + alpha * (-jnp.abs(idx[:, None] - idx[None, :])
                                   .astype(jnp.float32))[None]

    masked_vec = scores * mask
    mx = jnp.max(masked_vec, axis=-1, keepdims=True)
    ex = jnp.exp(masked_vec - mx) * mask
    sm = jnp.sum(ex, axis=-1, keepdims=True)
    sm = sm + (sm == 0).astype(jnp.float32)
    attn = ex / (sm + 1e-20)
    outs = jnp.einsum('nqk,nkd->nqd', attn, v_s)                        # (H*B, L, d_k)
    # torch.cat(torch.split(outs, B, dim=0), dim=-1)
    outs = jnp.concatenate([outs[h * B:(h + 1) * B] for h in range(n_head)], axis=-1)
    outs = outs @ params['w_proj'].T + params['b_proj']
    outs = ln(outs, params['ln2_g'], params['ln2_b'])
    return outs     # dropout is identity in eval mode


if __name__ == "__main__":
    B, L = 2, 8            # batch, seq_len
    D, H = 32, 4           # d_e (d_model), num_heads  ->  d_k = d_v = 8
    d_k = D // H

    key = jax.random.PRNGKey(0)
    ks = jax.random.split(key, 12)
    xavier = math.sqrt(2.0 / (D + d_k))     # ~ xavier_normal_ scale
    bound = 1.0 / math.sqrt(D)              # nn.Linear default init range
    params = {
        'w_qs': xavier * jax.random.normal(ks[0], (H, D, d_k), jnp.float32),
        'w_ks': xavier * jax.random.normal(ks[1], (H, D, d_k), jnp.float32),
        'w_vs': xavier * jax.random.normal(ks[2], (H, D, d_k), jnp.float32),
        'ln_g': 1.0 + 0.1 * jax.random.normal(ks[3], (d_k,), jnp.float32),
        'ln_b': 0.1 * jax.random.normal(ks[4], (d_k,), jnp.float32),
        'w_proj': jax.random.uniform(ks[5], (D, H * d_k), jnp.float32, -bound, bound),
        'b_proj': jax.random.uniform(ks[6], (D,), jnp.float32, -bound, bound),
        'ln2_g': 1.0 + 0.1 * jax.random.normal(ks[7], (D,), jnp.float32),
        'ln2_b': 0.1 * jax.random.normal(ks[8], (D,), jnp.float32),
    }
    # One-time weight re-layout (outside the hot path) for both numeric paths.
    packed_f32 = prepare_params(params, H, mxu_dtype=jnp.float32)
    packed_bf16 = prepare_params(params, H, mxu_dtype=jnp.bfloat16)

    q = jax.random.normal(ks[9], (B, L, D), jnp.float32)
    k = jax.random.normal(ks[10], (B, L, D), jnp.float32)
    v = jax.random.normal(ks[11], (B, L, D), jnp.float32)
    lengths = jnp.array([L, 5])             # valid-token lengths per batch row
    rep_mask = (jnp.arange(L)[None, :] < lengths[:, None]).astype(
        jnp.float32)[:, :, None]            # (B, L, 1)

    configs = [
        dict(direction=None, alpha=1.0, use_dist_mask=False),
        dict(direction='fw', alpha=1.5, use_dist_mask=True),
    ]
    for cfg in configs:
        ref = mha_ref(q, k, v, rep_mask, params, n_head=H, **cfg)

        # Strict parity check on the f32 path (exact module semantics).
        out32 = jax.block_until_ready(multi_head_attention(
            q, k, v, rep_mask, packed_f32, n_head=H, mxu_dtype=jnp.float32, **cfg))
        assert out32.shape == (B, L, D)
        assert jnp.allclose(out32, ref, atol=2e-3, rtol=2e-3), \
            f"f32 path mismatch vs reference: {cfg}"

        # bf16-MXU perf path (f32 accumulation): check relative Frobenius error.
        out16 = jax.block_until_ready(multi_head_attention(
            q, k, v, rep_mask, packed_bf16, n_head=H, mxu_dtype=jnp.bfloat16, **cfg))
        assert out16.shape == (B, L, D)
        rel = float(jnp.linalg.norm(out16 - ref) / (jnp.linalg.norm(ref) + 1e-12))
        assert rel < 5e-2, f"bf16 path relative error {rel:.4f} too high: {cfg}"

    print("KERNEL_OK")
</pallas_src>

<mosaic_0001>
module attributes {stable_mosaic.version = 11 : i64} {
  func.func @_mha_kernel(%arg0: i32, %arg1: memref<1x8x32xf32, #tpu.memory_space<vmem>>, %arg2: memref<1x8x32xf32, #tpu.memory_space<vmem>>, %arg3: memref<1x8x32xf32, #tpu.memory_space<vmem>>, %arg4: memref<1x8x1xf32, #tpu.memory_space<vmem>>, %arg5: memref<1x1x8xf32, #tpu.memory_space<vmem>>, %arg6: memref<32x32xf32, #tpu.memory_space<vmem>>, %arg7: memref<32x32xf32, #tpu.memory_space<vmem>>, %arg8: memref<32x32xf32, #tpu.memory_space<vmem>>, %arg9: memref<32x32xf32, #tpu.memory_space<vmem>>, %arg10: memref<1x32xf32, #tpu.memory_space<vmem>>, %arg11: memref<1x32xf32, #tpu.memory_space<vmem>>, %arg12: memref<32x32xf32, #tpu.memory_space<vmem>>, %arg13: memref<1x32xf32, #tpu.memory_space<vmem>>, %arg14: memref<1x32xf32, #tpu.memory_space<vmem>>, %arg15: memref<1x32xf32, #tpu.memory_space<vmem>>, %arg16: memref<1x8x32xf32, #tpu.memory_space<vmem>>, %arg17: memref<8x32xf32, #tpu.memory_space<vmem>>) attributes {dimension_semantics = [#tpu.dimension_semantics<parallel>], iteration_bounds = array<i64: 2>, scalar_prefetch = 0 : i64, scratch_operands = 1 : i64, tpu.core_type = #tpu.core_type<tc>, window_params = [{transform_indices = @transform_0, window_bounds = array<i64: 1, 8, 32>}, {transform_indices = @transform_1, window_bounds = array<i64: 1, 8, 32>}, {transform_indices = @transform_2, window_bounds = array<i64: 1, 8, 32>}, {transform_indices = @transform_3, window_bounds = array<i64: 1, 8, 1>}, {transform_indices = @transform_4, window_bounds = array<i64: 1, 1, 8>}, {pipeline_mode = #tpu.pipeline_mode<synchronous>, transform_indices = @transform_5, window_bounds = array<i64: 32, 32>}, {pipeline_mode = #tpu.pipeline_mode<synchronous>, transform_indices = @transform_6, window_bounds = array<i64: 32, 32>}, {pipeline_mode = #tpu.pipeline_mode<synchronous>, transform_indices = @transform_7, window_bounds = array<i64: 32, 32>}, {pipeline_mode = #tpu.pipeline_mode<synchronous>, transform_indices = @transform_8, window_bounds = array<i64: 32, 32>}, {pipeline_mode = #tpu.pipeline_mode<synchronous>, transform_indices = @transform_9, window_bounds = array<i64: 1, 32>}, {pipeline_mode = #tpu.pipeline_mode<synchronous>, transform_indices = @transform_10, window_bounds = array<i64: 1, 32>}, {pipeline_mode = #tpu.pipeline_mode<synchronous>, transform_indices = @transform_11, window_bounds = array<i64: 32, 32>}, {pipeline_mode = #tpu.pipeline_mode<synchronous>, transform_indices = @transform_12, window_bounds = array<i64: 1, 32>}, {pipeline_mode = #tpu.pipeline_mode<synchronous>, transform_indices = @transform_13, window_bounds = array<i64: 1, 32>}, {pipeline_mode = #tpu.pipeline_mode<synchronous>, transform_indices = @transform_14, window_bounds = array<i64: 1, 32>}, {transform_indices = @transform_15, window_bounds = array<i64: 1, 8, 32>}]} {
    %c0 = arith.constant 0 : index
    %c0_0 = arith.constant 0 : index
    %c0_1 = arith.constant 0 : index
    %0 = vector.load %arg1[%c0, %c0_0, %c0_1] : memref<1x8x32xf32, #tpu.memory_space<vmem>>, vector<1x8x32xf32>
    %1 = vector.shape_cast %0 : vector<1x8x32xf32> to vector<8x32xf32>
    %c0_2 = arith.constant 0 : index
    %c0_3 = arith.constant 0 : index
    %c0_4 = arith.constant 0 : index
    %2 = vector.load %arg2[%c0_2, %c0_3, %c0_4] : memref<1x8x32xf32, #tpu.memory_space<vmem>>, vector<1x8x32xf32>
    %3 = vector.shape_cast %2 : vector<1x8x32xf32> to vector<8x32xf32>
    %c0_5 = arith.constant 0 : index
    %c0_6 = arith.constant 0 : index
    %c0_7 = arith.constant 0 : index
    %4 = vector.load %arg3[%c0_5, %c0_6, %c0_7] : memref<1x8x32xf32, #tpu.memory_space<vmem>>, vector<1x8x32xf32>
    %5 = vector.shape_cast %4 : vector<1x8x32xf32> to vector<8x32xf32>
    %c0_8 = arith.constant 0 : index
    %c0_9 = arith.constant 0 : index
    %6 = vector.load %arg6[%c0_8, %c0_9] : memref<32x32xf32, #tpu.memory_space<vmem>>, vector<32x32xf32>
    %c0_10 = arith.constant 0 : index
    %c0_11 = arith.constant 0 : index
    %7 = vector.load %arg7[%c0_10, %c0_11] : memref<32x32xf32, #tpu.memory_space<vmem>>, vector<32x32xf32>
    %c0_12 = arith.constant 0 : index
    %c0_13 = arith.constant 0 : index
    %8 = vector.load %arg8[%c0_12, %c0_13] : memref<32x32xf32, #tpu.memory_space<vmem>>, vector<32x32xf32>
    %c0_14 = arith.constant 0 : index
    %c0_15 = arith.constant 0 : index
    %9 = vector.load %arg12[%c0_14, %c0_15] : memref<32x32xf32, #tpu.memory_space<vmem>>, vector<32x32xf32>
    %c0_16 = arith.constant 0 : index
    %c0_17 = arith.constant 0 : index
    %c0_18 = arith.constant 0 : index
    %10 = vector.load %arg4[%c0_16, %c0_17, %c0_18] : memref<1x8x1xf32, #tpu.memory_space<vmem>>, vector<1x8x1xf32>
    %11 = vector.shape_cast %10 : vector<1x8x1xf32> to vector<8x1xf32>
    %c0_19 = arith.constant 0 : index
    %c0_20 = arith.constant 0 : index
    %c0_21 = arith.constant 0 : index
    %12 = vector.load %arg5[%c0_19, %c0_20, %c0_21] : memref<1x1x8xf32, #tpu.memory_space<vmem>>, vector<1x1x8xf32>
    %13 = vector.shape_cast %12 : vector<1x1x8xf32> to vector<1x8xf32>
    %c0_22 = arith.constant 0 : index
    %c0_23 = arith.constant 0 : index
    %14 = vector.load %arg9[%c0_22, %c0_23] : memref<32x32xf32, #tpu.memory_space<vmem>>, vector<32x32xf32>
    %c0_24 = arith.constant 0 : index
    %c0_25 = arith.constant 0 : index
    %15 = vector.load %arg10[%c0_24, %c0_25] : memref<1x32xf32, #tpu.memory_space<vmem>>, vector<1x32xf32>
    %c0_26 = arith.constant 0 : index
    %c0_27 = arith.constant 0 : index
    %16 = vector.load %arg11[%c0_26, %c0_27] : memref<1x32xf32, #tpu.memory_space<vmem>>, vector<1x32xf32>
    %c0_28 = arith.constant 0 : index
    %c0_29 = arith.constant 0 : index
    %17 = vector.load %arg13[%c0_28, %c0_29] : memref<1x32xf32, #tpu.memory_space<vmem>>, vector<1x32xf32>
    %c0_30 = arith.constant 0 : index
    %c0_31 = arith.constant 0 : index
    %18 = vector.load %arg14[%c0_30, %c0_31] : memref<1x32xf32, #tpu.memory_space<vmem>>, vector<1x32xf32>
    %c0_32 = arith.constant 0 : index
    %c0_33 = arith.constant 0 : index
    %19 = vector.load %arg15[%c0_32, %c0_33] : memref<1x32xf32, #tpu.memory_space<vmem>>, vector<1x32xf32>
    %cst = arith.constant dense<0.000000e+00> : vector<8x32xf32>
    %20 = tpu.matmul %1, %6, %cst {dimension_numbers = #tpu.dot_dimension_numbers<[1], [0], [0], [1], [0, 0, 1, 1], [], []>} : vector<8x32xf32>, vector<32x32xf32>, vector<8x32xf32> -> vector<8x32xf32>
    %cst_34 = arith.constant dense<0.000000e+00> : vector<8x32xf32>
    %21 = tpu.matmul %3, %7, %cst_34 {dimension_numbers = #tpu.dot_dimension_numbers<[1], [0], [0], [1], [0, 0, 1, 1], [], []>} : vector<8x32xf32>, vector<32x32xf32>, vector<8x32xf32> -> vector<8x32xf32>
    %cst_35 = arith.constant dense<0.000000e+00> : vector<8x32xf32>
    %22 = tpu.matmul %5, %8, %cst_35 {dimension_numbers = #tpu.dot_dimension_numbers<[1], [0], [0], [1], [0, 0, 1, 1], [], []>} : vector<8x32xf32>, vector<32x32xf32>, vector<8x32xf32> -> vector<8x32xf32>
    %cst_36 = arith.constant dense<0.000000e+00> : vector<8x32xf32>
    %23 = tpu.matmul %20, %14, %cst_36 {dimension_numbers = #tpu.dot_dimension_numbers<[1], [0], [0], [1], [0, 0, 1, 1], [], []>} : vector<8x32xf32>, vector<32x32xf32>, vector<8x32xf32> -> vector<8x32xf32>
    %24 = arith.subf %20, %23 : vector<8x32xf32>
    %25 = arith.mulf %24, %24 : vector<8x32xf32>
    %cst_37 = arith.constant dense<0.000000e+00> : vector<8x32xf32>
    %26 = tpu.matmul %25, %14, %cst_37 {dimension_numbers = #tpu.dot_dimension_numbers<[1], [0], [0], [1], [0, 0, 1, 1], [], []>} : vector<8x32xf32>, vector<32x32xf32>, vector<8x32xf32> -> vector<8x32xf32>
    %cst_38 = arith.constant 9.99999974E-6 : f32
    %27 = vector.broadcast %cst_38 : f32 to vector<8x32xf32>
    %28 = arith.addf %26, %27 : vector<8x32xf32>
    %29 = math.rsqrt %28 : vector<8x32xf32>
    %30 = arith.mulf %24, %29 : vector<8x32xf32>
    %31 = vector.broadcast %15 : vector<1x32xf32> to vector<8x32xf32>
    %32 = arith.mulf %30, %31 : vector<8x32xf32>
    %33 = vector.broadcast %16 : vector<1x32xf32> to vector<8x32xf32>
    %34 = arith.addf %32, %33 : vector<8x32xf32>
    %cst_39 = arith.constant dense<0.000000e+00> : vector<8x32xf32>
    %35 = tpu.matmul %21, %14, %cst_39 {dimension_numbers = #tpu.dot_dimension_numbers<[1], [0], [0], [1], [0, 0, 1, 1], [], []>} : vector<8x32xf32>, vector<32x32xf32>, vector<8x32xf32> -> vector<8x32xf32>
    %36 = arith.subf %21, %35 : vector<8x32xf32>
    %37 = arith.mulf %36, %36 : vector<8x32xf32>
    %cst_40 = arith.constant dense<0.000000e+00> : vector<8x32xf32>
    %38 = tpu.matmul %37, %14, %cst_40 {dimension_numbers = #tpu.dot_dimension_numbers<[1], [0], [0], [1], [0, 0, 1, 1], [], []>} : vector<8x32xf32>, vector<32x32xf32>, vector<8x32xf32> -> vector<8x32xf32>
    %cst_41 = arith.constant 9.99999974E-6 : f32
    %39 = vector.broadcast %cst_41 : f32 to vector<8x32xf32>
    %40 = arith.addf %38, %39 : vector<8x32xf32>
    %41 = math.rsqrt %40 : vector<8x32xf32>
    %42 = arith.mulf %36, %41 : vector<8x32xf32>
    %43 = vector.broadcast %15 : vector<1x32xf32> to vector<8x32xf32>
    %44 = arith.mulf %42, %43 : vector<8x32xf32>
    %45 = vector.broadcast %16 : vector<1x32xf32> to vector<8x32xf32>
    %46 = arith.addf %44, %45 : vector<8x32xf32>
    %cst_42 = arith.constant dense<0.000000e+00> : vector<8x32xf32>
    %47 = tpu.matmul %22, %14, %cst_42 {dimension_numbers = #tpu.dot_dimension_numbers<[1], [0], [0], [1], [0, 0, 1, 1], [], []>} : vector<8x32xf32>, vector<32x32xf32>, vector<8x32xf32> -> vector<8x32xf32>
    %48 = arith.subf %22, %47 : vector<8x32xf32>
    %49 = arith.mulf %48, %48 : vector<8x32xf32>
    %cst_43 = arith.constant dense<0.000000e+00> : vector<8x32xf32>
    %50 = tpu.matmul %49, %14, %cst_43 {dimension_numbers = #tpu.dot_dimension_numbers<[1], [0], [0], [1], [0, 0, 1, 1], [], []>} : vector<8x32xf32>, vector<32x32xf32>, vector<8x32xf32> -> vector<8x32xf32>
    %cst_44 = arith.constant 9.99999974E-6 : f32
    %51 = vector.broadcast %cst_44 : f32 to vector<8x32xf32>
    %52 = arith.addf %50, %51 : vector<8x32xf32>
    %53 = math.rsqrt %52 : vector<8x32xf32>
    %54 = arith.mulf %48, %53 : vector<8x32xf32>
    %55 = vector.broadcast %15 : vector<1x32xf32> to vector<8x32xf32>
    %56 = arith.mulf %54, %55 : vector<8x32xf32>
    %57 = vector.broadcast %16 : vector<1x32xf32> to vector<8x32xf32>
    %58 = arith.addf %56, %57 : vector<8x32xf32>
    %59 = vector.broadcast %11 : vector<8x1xf32> to vector<8x8xf32>
    %60 = vector.broadcast %13 : vector<1x8xf32> to vector<8x8xf32>
    %61 = arith.mulf %59, %60 : vector<8x8xf32>
    %62 = vector.extract_strided_slice %34 {offsets = [0, 0], sizes = [8, 8], strides = [1, 1]} : vector<8x32xf32> to vector<8x8xf32>
    %63 = vector.extract_strided_slice %46 {offsets = [0, 0], sizes = [8, 8], strides = [1, 1]} : vector<8x32xf32> to vector<8x8xf32>
    %64 = vector.extract_strided_slice %58 {offsets = [0, 0], sizes = [8, 8], strides = [1, 1]} : vector<8x32xf32> to vector<8x8xf32>
    %cst_45 = arith.constant dense<0.000000e+00> : vector<8x8xf32>
    %65 = tpu.matmul %62, %63, %cst_45 {dimension_numbers = #tpu.dot_dimension_numbers<[1], [1], [0], [0], [0, 0, 1, 0], [], []>} : vector<8x8xf32>, vector<8x8xf32>, vector<8x8xf32> -> vector<8x8xf32>
    %cst_46 = arith.constant 0.176776692 : f32
    %66 = vector.broadcast %cst_46 : f32 to vector<8x8xf32>
    %67 = arith.mulf %65, %66 : vector<8x8xf32>
    %68 = arith.mulf %67, %61 : vector<8x8xf32>
    %cst_47 = arith.constant dense<0xFF800000> : vector<8xf32>
    %69 = vector.multi_reduction <maximumf>, %68, %cst_47 [1] : vector<8x8xf32> to vector<8xf32>
    %70 = vector.shape_cast %69 : vector<8xf32> to vector<8x1xf32>
    %71 = vector.broadcast %70 : vector<8x1xf32> to vector<8x8xf32>
    %72 = arith.subf %68, %71 : vector<8x8xf32>
    %73 = math.exp %72 : vector<8x8xf32>
    %74 = arith.mulf %73, %61 : vector<8x8xf32>
    %cst_48 = arith.constant dense<0.000000e+00> : vector<8xf32>
    %75 = vector.multi_reduction <add>, %74, %cst_48 [1] : vector<8x8xf32> to vector<8xf32>
    %76 = vector.shape_cast %75 : vector<8xf32> to vector<8x1xf32>
    %cst_49 = arith.constant 0.000000e+00 : f32
    %77 = vector.broadcast %cst_49 : f32 to vector<8x1xf32>
    %78 = arith.cmpf oeq, %76, %77 : vector<8x1xf32>
    %79 = arith.extui %78 : vector<8x1xi1> to vector<8x1xi32>
    %80 = arith.sitofp %79 : vector<8x1xi32> to vector<8x1xf32>
    %81 = arith.addf %76, %80 : vector<8x1xf32>
    %cst_50 = arith.constant 9.99999968E-21 : f32
    %82 = vector.broadcast %cst_50 : f32 to vector<8x1xf32>
    %83 = arith.addf %81, %82 : vector<8x1xf32>
    %84 = tpu.reciprocal %83 : vector<8x1xf32> -> vector<8x1xf32>
    %85 = vector.broadcast %84 : vector<8x1xf32> to vector<8x8xf32>
    %86 = arith.mulf %74, %85 : vector<8x8xf32>
    %cst_51 = arith.constant dense<0.000000e+00> : vector<8x8xf32>
    %87 = tpu.matmul %86, %64, %cst_51 {dimension_numbers = #tpu.dot_dimension_numbers<[1], [0], [0], [1], [0, 0, 1, 1], [], []>} : vector<8x8xf32>, vector<8x8xf32>, vector<8x8xf32> -> vector<8x8xf32>
    %c0_52 = arith.constant 0 : index
    %c0_53 = arith.constant 0 : index
    %88 = vector.load %arg17[%c0_52, %c0_53] : memref<8x32xf32, #tpu.memory_space<vmem>>, vector<8x8xf32>
    tpu.vector_store %arg17[%c0_52, %c0_53], %87 {strides = array<i32>} : memref<8x32xf32, #tpu.memory_space<vmem>>, vector<8x8xf32>,
    %89 = vector.extract_strided_slice %34 {offsets = [0, 8], sizes = [8, 8], strides = [1, 1]} : vector<8x32xf32> to vector<8x8xf32>
    %90 = vector.extract_strided_slice %46 {offsets = [0, 8], sizes = [8, 8], strides = [1, 1]} : vector<8x32xf32> to vector<8x8xf32>
    %91 = vector.extract_strided_slice %58 {offsets = [0, 8], sizes = [8, 8], strides = [1, 1]} : vector<8x32xf32> to vector<8x8xf32>
    %cst_54 = arith.constant dense<0.000000e+00> : vector<8x8xf32>
    %92 = tpu.matmul %89, %90, %cst_54 {dimension_numbers = #tpu.dot_dimension_numbers<[1], [1], [0], [0], [0, 0, 1, 0], [], []>} : vector<8x8xf32>, vector<8x8xf32>, vector<8x8xf32> -> vector<8x8xf32>
    %cst_55 = arith.constant 0.176776692 : f32
    %93 = vector.broadcast %cst_55 : f32 to vector<8x8xf32>
    %94 = arith.mulf %92, %93 : vector<8x8xf32>
    %95 = arith.mulf %94, %61 : vector<8x8xf32>
    %cst_56 = arith.constant dense<0xFF800000> : vector<8xf32>
    %96 = vector.multi_reduction <maximumf>, %95, %cst_56 [1] : vector<8x8xf32> to vector<8xf32>
    %97 = vector.shape_cast %96 : vector<8xf32> to vector<8x1xf32>
    %98 = vector.broadcast %97 : vector<8x1xf32> to vector<8x8xf32>
    %99 = arith.subf %95, %98 : vector<8x8xf32>
    %100 = math.exp %99 : vector<8x8xf32>
    %101 = arith.mulf %100, %61 : vector<8x8xf32>
    %cst_57 = arith.constant dense<0.000000e+00> : vector<8xf32>
    %102 = vector.multi_reduction <add>, %101, %cst_57 [1] : vector<8x8xf32> to vector<8xf32>
    %103 = vector.shape_cast %102 : vector<8xf32> to vector<8x1xf32>
    %cst_58 = arith.constant 0.000000e+00 : f32
    %104 = vector.broadcast %cst_58 : f32 to vector<8x1xf32>
    %105 = arith.cmpf oeq, %103, %104 : vector<8x1xf32>
    %106 = arith.extui %105 : vector<8x1xi1> to vector<8x1xi32>
    %107 = arith.sitofp %106 : vector<8x1xi32> to vector<8x1xf32>
    %108 = arith.addf %103, %107 : vector<8x1xf32>
    %cst_59 = arith.constant 9.99999968E-21 : f32
    %109 = vector.broadcast %cst_59 : f32 to vector<8x1xf32>
    %110 = arith.addf %108, %109 : vector<8x1xf32>
    %111 = tpu.reciprocal %110 : vector<8x1xf32> -> vector<8x1xf32>
    %112 = vector.broadcast %111 : vector<8x1xf32> to vector<8x8xf32>
    %113 = arith.mulf %101, %112 : vector<8x8xf32>
    %cst_60 = arith.constant dense<0.000000e+00> : vector<8x8xf32>
    %114 = tpu.matmul %113, %91, %cst_60 {dimension_numbers = #tpu.dot_dimension_numbers<[1], [0], [0], [1], [0, 0, 1, 1], [], []>} : vector<8x8xf32>, vector<8x8xf32>, vector<8x8xf32> -> vector<8x8xf32>
    %c0_61 = arith.constant 0 : index
    %c8 = arith.constant 8 : index
    %115 = vector.load %arg17[%c0_61, %c8] : memref<8x32xf32, #tpu.memory_space<vmem>>, vector<8x8xf32>
    tpu.vector_store %arg17[%c0_61, %c8], %114 {strides = array<i32>} : memref<8x32xf32, #tpu.memory_space<vmem>>, vector<8x8xf32>,
    %116 = vector.extract_strided_slice %34 {offsets = [0, 16], sizes = [8, 8], strides = [1, 1]} : vector<8x32xf32> to vector<8x8xf32>
    %117 = vector.extract_strided_slice %46 {offsets = [0, 16], sizes = [8, 8], strides = [1, 1]} : vector<8x32xf32> to vector<8x8xf32>
    %118 = vector.extract_strided_slice %58 {offsets = [0, 16], sizes = [8, 8], strides = [1, 1]} : vector<8x32xf32> to vector<8x8xf32>
    %cst_62 = arith.constant dense<0.000000e+00> : vector<8x8xf32>
    %119 = tpu.matmul %116, %117, %cst_62 {dimension_numbers = #tpu.dot_dimension_numbers<[1], [1], [0], [0], [0, 0, 1, 0], [], []>} : vector<8x8xf32>, vector<8x8xf32>, vector<8x8xf32> -> vector<8x8xf32>
    %cst_63 = arith.constant 0.176776692 : f32
    %120 = vector.broadcast %cst_63 : f32 to vector<8x8xf32>
    %121 = arith.mulf %119, %120 : vector<8x8xf32>
    %122 = arith.mulf %121, %61 : vector<8x8xf32>
    %cst_64 = arith.constant dense<0xFF800000> : vector<8xf32>
    %123 = vector.multi_reduction <maximumf>, %122, %cst_64 [1] : vector<8x8xf32> to vector<8xf32>
    %124 = vector.shape_cast %123 : vector<8xf32> to vector<8x1xf32>
    %125 = vector.broadcast %124 : vector<8x1xf32> to vector<8x8xf32>
    %126 = arith.subf %122, %125 : vector<8x8xf32>
    %127 = math.exp %126 : vector<8x8xf32>
    %128 = arith.mulf %127, %61 : vector<8x8xf32>
    %cst_65 = arith.constant dense<0.000000e+00> : vector<8xf32>
    %129 = vector.multi_reduction <add>, %128, %cst_65 [1] : vector<8x8xf32> to vector<8xf32>
    %130 = vector.shape_cast %129 : vector<8xf32> to vector<8x1xf32>
    %cst_66 = arith.constant 0.000000e+00 : f32
    %131 = vector.broadcast %cst_66 : f32 to vector<8x1xf32>
    %132 = arith.cmpf oeq, %130, %131 : vector<8x1xf32>
    %133 = arith.extui %132 : vector<8x1xi1> to vector<8x1xi32>
    %134 = arith.sitofp %133 : vector<8x1xi32> to vector<8x1xf32>
    %135 = arith.addf %130, %134 : vector<8x1xf32>
    %cst_67 = arith.constant 9.99999968E-21 : f32
    %136 = vector.broadcast %cst_67 : f32 to vector<8x1xf32>
    %137 = arith.addf %135, %136 : vector<8x1xf32>
    %138 = tpu.reciprocal %137 : vector<8x1xf32> -> vector<8x1xf32>
    %139 = vector.broadcast %138 : vector<8x1xf32> to vector<8x8xf32>
    %140 = arith.mulf %128, %139 : vector<8x8xf32>
    %cst_68 = arith.constant dense<0.000000e+00> : vector<8x8xf32>
    %141 = tpu.matmul %140, %118, %cst_68 {dimension_numbers = #tpu.dot_dimension_numbers<[1], [0], [0], [1], [0, 0, 1, 1], [], []>} : vector<8x8xf32>, vector<8x8xf32>, vector<8x8xf32> -> vector<8x8xf32>
    %c0_69 = arith.constant 0 : index
    %c16 = arith.constant 16 : index
    %142 = vector.load %arg17[%c0_69, %c16] : memref<8x32xf32, #tpu.memory_space<vmem>>, vector<8x8xf32>
    tpu.vector_store %arg17[%c0_69, %c16], %141 {strides = array<i32>} : memref<8x32xf32, #tpu.memory_space<vmem>>, vector<8x8xf32>,
    %143 = vector.extract_strided_slice %34 {offsets = [0, 24], sizes = [8, 8], strides = [1, 1]} : vector<8x32xf32> to vector<8x8xf32>
    %144 = vector.extract_strided_slice %46 {offsets = [0, 24], sizes = [8, 8], strides = [1, 1]} : vector<8x32xf32> to vector<8x8xf32>
    %145 = vector.extract_strided_slice %58 {offsets = [0, 24], sizes = [8, 8], strides = [1, 1]} : vector<8x32xf32> to vector<8x8xf32>
    %cst_70 = arith.constant dense<0.000000e+00> : vector<8x8xf32>
    %146 = tpu.matmul %143, %144, %cst_70 {dimension_numbers = #tpu.dot_dimension_numbers<[1], [1], [0], [0], [0, 0, 1, 0], [], []>} : vector<8x8xf32>, vector<8x8xf32>, vector<8x8xf32> -> vector<8x8xf32>
    %cst_71 = arith.constant 0.176776692 : f32
    %147 = vector.broadcast %cst_71 : f32 to vector<8x8xf32>
    %148 = arith.mulf %146, %147 : vector<8x8xf32>
    %149 = arith.mulf %148, %61 : vector<8x8xf32>
    %cst_72 = arith.constant dense<0xFF800000> : vector<8xf32>
    %150 = vector.multi_reduction <maximumf>, %149, %cst_72 [1] : vector<8x8xf32> to vector<8xf32>
    %151 = vector.shape_cast %150 : vector<8xf32> to vector<8x1xf32>
    %152 = vector.broadcast %151 : vector<8x1xf32> to vector<8x8xf32>
    %153 = arith.subf %149, %152 : vector<8x8xf32>
    %154 = math.exp %153 : vector<8x8xf32>
    %155 = arith.mulf %154, %61 : vector<8x8xf32>
    %cst_73 = arith.constant dense<0.000000e+00> : vector<8xf32>
    %156 = vector.multi_reduction <add>, %155, %cst_73 [1] : vector<8x8xf32> to vector<8xf32>
    %157 = vector.shape_cast %156 : vector<8xf32> to vector<8x1xf32>
    %cst_74 = arith.constant 0.000000e+00 : f32
    %158 = vector.broadcast %cst_74 : f32 to vector<8x1xf32>
    %159 = arith.cmpf oeq, %157, %158 : vector<8x1xf32>
    %160 = arith.extui %159 : vector<8x1xi1> to vector<8x1xi32>
    %161 = arith.sitofp %160 : vector<8x1xi32> to vector<8x1xf32>
    %162 = arith.addf %157, %161 : vector<8x1xf32>
    %cst_75 = arith.constant 9.99999968E-21 : f32
    %163 = vector.broadcast %cst_75 : f32 to vector<8x1xf32>
    %164 = arith.addf %162, %163 : vector<8x1xf32>
    %165 = tpu.reciprocal %164 : vector<8x1xf32> -> vector<8x1xf32>
    %166 = vector.broadcast %165 : vector<8x1xf32> to vector<8x8xf32>
    %167 = arith.mulf %155, %166 : vector<8x8xf32>
    %cst_76 = arith.constant dense<0.000000e+00> : vector<8x8xf32>
    %168 = tpu.matmul %167, %145, %cst_76 {dimension_numbers = #tpu.dot_dimension_numbers<[1], [0], [0], [1], [0, 0, 1, 1], [], []>} : vector<8x8xf32>, vector<8x8xf32>, vector<8x8xf32> -> vector<8x8xf32>
    %c0_77 = arith.constant 0 : index
    %c24 = arith.constant 24 : index
    %169 = vector.load %arg17[%c0_77, %c24] : memref<8x32xf32, #tpu.memory_space<vmem>>, vector<8x8xf32>
    tpu.vector_store %arg17[%c0_77, %c24], %168 {strides = array<i32>} : memref<8x32xf32, #tpu.memory_space<vmem>>, vector<8x8xf32>,
    %c0_78 = arith.constant 0 : index
    %c0_79 = arith.constant 0 : index
    %170 = vector.load %arg17[%c0_78, %c0_79] : memref<8x32xf32, #tpu.memory_space<vmem>>, vector<8x32xf32>
    %cst_80 = arith.constant dense<0.000000e+00> : vector<8x32xf32>
    %171 = tpu.matmul %170, %9, %cst_80 {dimension_numbers = #tpu.dot_dimension_numbers<[1], [0], [0], [1], [0, 0, 1, 1], [], []>} : vector<8x32xf32>, vector<32x32xf32>, vector<8x32xf32> -> vector<8x32xf32>
    %172 = vector.broadcast %17 : vector<1x32xf32> to vector<8x32xf32>
    %173 = arith.addf %171, %172 : vector<8x32xf32>
    %cst_81 = arith.constant dense<0.000000e+00> : vector<8xf32>
    %174 = vector.multi_reduction <add>, %173, %cst_81 [1] : vector<8x32xf32> to vector<8xf32>
    %175 = vector.shape_cast %174 : vector<8xf32> to vector<8x1xf32>
    %cst_82 = arith.constant 3.200000e+01 : f32
    %176 = vector.broadcast %cst_82 : f32 to vector<8x1xf32>
    %177 = arith.divf %175, %176 : vector<8x1xf32>
    %178 = vector.broadcast %177 : vector<8x1xf32> to vector<8x32xf32>
    %179 = arith.subf %173, %178 : vector<8x32xf32>
    %180 = arith.mulf %179, %179 : vector<8x32xf32>
    %cst_83 = arith.constant dense<0.000000e+00> : vector<8xf32>
    %181 = vector.multi_reduction <add>, %180, %cst_83 [1] : vector<8x32xf32> to vector<8xf32>
    %182 = vector.shape_cast %181 : vector<8xf32> to vector<8x1xf32>
    %cst_84 = arith.constant 3.200000e+01 : f32
    %183 = vector.broadcast %cst_84 : f32 to vector<8x1xf32>
    %184 = arith.divf %182, %183 : vector<8x1xf32>
    %185 = vector.broadcast %177 : vector<8x1xf32> to vector<8x32xf32>
    %186 = arith.subf %173, %185 : vector<8x32xf32>
    %cst_85 = arith.constant 9.99999974E-6 : f32
    %187 = vector.broadcast %cst_85 : f32 to vector<8x1xf32>
    %188 = arith.addf %184, %187 : vector<8x1xf32>
    %189 = math.rsqrt %188 : vector<8x1xf32>
    %190 = vector.broadcast %189 : vector<8x1xf32> to vector<8x32xf32>
    %191 = arith.mulf %186, %190 : vector<8x32xf32>
    %192 = vector.broadcast %18 : vector<1x32xf32> to vector<8x32xf32>
    %193 = arith.mulf %191, %192 : vector<8x32xf32>
    %194 = vector.broadcast %19 : vector<1x32xf32> to vector<8x32xf32>
    %195 = arith.addf %193, %194 : vector<8x32xf32>
    %c0_86 = arith.constant 0 : index
    %c0_87 = arith.constant 0 : index
    %c0_88 = arith.constant 0 : index
    %196 = vector.load %arg16[%c0_86, %c0_87, %c0_88] : memref<1x8x32xf32, #tpu.memory_space<vmem>>, vector<1x8x32xf32>
    %197 = vector.shape_cast %196 : vector<1x8x32xf32> to vector<8x32xf32>
    %198 = vector.shape_cast %195 : vector<8x32xf32> to vector<1x8x32xf32>
    tpu.vector_store %arg16[%c0_86, %c0_87, %c0_88], %198 {strides = array<i32>} : memref<1x8x32xf32, #tpu.memory_space<vmem>>, vector<1x8x32xf32>,
    return
  }
  func.func @transform_0(%arg0: i32) -> (i32, i32, i32) {
    %c0_i32 = arith.constant 0 : i32
    %c0_i32_0 = arith.constant 0 : i32
    %c0_i32_1 = arith.constant 0 : i32
    return %arg0, %c0_i32, %c0_i32_0 : i32, i32, i32
  }
  func.func @transform_1(%arg0: i32) -> (i32, i32, i32) {
    %c0_i32 = arith.constant 0 : i32
    %c0_i32_0 = arith.constant 0 : i32
    %c0_i32_1 = arith.constant 0 : i32
    return %arg0, %c0_i32, %c0_i32_0 : i32, i32, i32
  }
  func.func @transform_2(%arg0: i32) -> (i32, i32, i32) {
    %c0_i32 = arith.constant 0 : i32
    %c0_i32_0 = arith.constant 0 : i32
    %c0_i32_1 = arith.constant 0 : i32
    return %arg0, %c0_i32, %c0_i32_0 : i32, i32, i32
  }
  func.func @transform_3(%arg0: i32) -> (i32, i32, i32) {
    %c0_i32 = arith.constant 0 : i32
    %c0_i32_0 = arith.constant 0 : i32
    %c0_i32_1 = arith.constant 0 : i32
    return %arg0, %c0_i32, %c0_i32_0 : i32, i32, i32
  }
  func.func @transform_4(%arg0: i32) -> (i32, i32, i32) {
    %c0_i32 = arith.constant 0 : i32
    %c0_i32_0 = arith.constant 0 : i32
    %c0_i32_1 = arith.constant 0 : i32
    return %arg0, %c0_i32, %c0_i32_0 : i32, i32, i32
  }
  func.func @transform_5(%arg0: i32) -> (i32, i32) {
    %c0_i32 = arith.constant 0 : i32
    %c0_i32_0 = arith.constant 0 : i32
    %c0_i32_1 = arith.constant 0 : i32
    return %c0_i32, %c0_i32_0 : i32, i32
  }
  func.func @transform_6(%arg0: i32) -> (i32, i32) {
    %c0_i32 = arith.constant 0 : i32
    %c0_i32_0 = arith.constant 0 : i32
    %c0_i32_1 = arith.constant 0 : i32
    return %c0_i32, %c0_i32_0 : i32, i32
  }
  func.func @transform_7(%arg0: i32) -> (i32, i32) {
    %c0_i32 = arith.constant 0 : i32
    %c0_i32_0 = arith.constant 0 : i32
    %c0_i32_1 = arith.constant 0 : i32
    return %c0_i32, %c0_i32_0 : i32, i32
  }
  func.func @transform_8(%arg0: i32) -> (i32, i32) {
    %c0_i32 = arith.constant 0 : i32
    %c0_i32_0 = arith.constant 0 : i32
    %c0_i32_1 = arith.constant 0 : i32
    return %c0_i32, %c0_i32_0 : i32, i32
  }
  func.func @transform_9(%arg0: i32) -> (i32, i32) {
    %c0_i32 = arith.constant 0 : i32
    %c0_i32_0 = arith.constant 0 : i32
    %c0_i32_1 = arith.constant 0 : i32
    return %c0_i32, %c0_i32_0 : i32, i32
  }
  func.func @transform_10(%arg0: i32) -> (i32, i32) {
    %c0_i32 = arith.constant 0 : i32
    %c0_i32_0 = arith.constant 0 : i32
    %c0_i32_1 = arith.constant 0 : i32
    return %c0_i32, %c0_i32_0 : i32, i32
  }
  func.func @transform_11(%arg0: i32) -> (i32, i32) {
    %c0_i32 = arith.constant 0 : i32
    %c0_i32_0 = arith.constant 0 : i32
    %c0_i32_1 = arith.constant 0 : i32
    return %c0_i32, %c0_i32_0 : i32, i32
  }
  func.func @transform_12(%arg0: i32) -> (i32, i32) {
    %c0_i32 = arith.constant 0 : i32
    %c0_i32_0 = arith.constant 0 : i32
    %c0_i32_1 = arith.constant 0 : i32
    return %c0_i32, %c0_i32_0 : i32, i32
  }
  func.func @transform_13(%arg0: i32) -> (i32, i32) {
    %c0_i32 = arith.constant 0 : i32
    %c0_i32_0 = arith.constant 0 : i32
    %c0_i32_1 = arith.constant 0 : i32
    return %c0_i32, %c0_i32_0 : i32, i32
  }
  func.func @transform_14(%arg0: i32) -> (i32, i32) {
    %c0_i32 = arith.constant 0 : i32
    %c0_i32_0 = arith.constant 0 : i32
    %c0_i32_1 = arith.constant 0 : i32
    return %c0_i32, %c0_i32_0 : i32, i32
  }
  func.func @transform_15(%arg0: i32) -> (i32, i32, i32) {
    %c0_i32 = arith.constant 0 : i32
    %c0_i32_0 = arith.constant 0 : i32
    %c0_i32_1 = arith.constant 0 : i32
    return %arg0, %c0_i32, %c0_i32_0 : i32, i32, i32
  }
}

</mosaic_0001>

<bundles_post_ra>
// kernel: tpu_custom_call.1
= control target key start
LH: loop header
LB: loop body
LE: loop exit
PB: predicated region body
PF: predicated region fallthrough
CT: control target
= control target key end

     0   :  { %s3782_s0 = inlined_call_operand.hbm [shape: f32[2,8,32], index: 0, kind: input, shape index: {}]   ;;  %s3783_s1 = inlined_call_operand.hbm [shape: f32[2,8,32], index: 1, kind: input, shape index: {}]   ;;  %s3784_s2 = inlined_call_operand.hbm [shape: f32[2,8,32], index: 2, kind: input, shape index: {}]   ;;  %s3785_s3 = inlined_call_operand.vmem [shape: f32[2,8,1], index: 3, kind: input, shape index: {}]   ;;  %s3786_s4 = inlined_call_operand.hbm [shape: f32[2,1,8], index: 4, kind: input, shape index: {}]   ;;  %s3787_s5 = inlined_call_operand.hbm [shape: f32[32,32], index: 5, kind: input, shape index: {}]   ;;  %s3788_s6 = inlined_call_operand.hbm [shape: f32[32,32], index: 6, kind: input, shape index: {}]   ;;  %s3789_s7 = inlined_call_operand.hbm [shape: f32[32,32], index: 7, kind: input, shape index: {}]   ;;  %s3790_s8 = inlined_call_operand.vmem [shape: f32[32,32], index: 8, kind: input, shape index: {}]   ;;  %s3791_s9 = inlined_call_operand.vmem [shape: f32[1,32], index: 9, kind: input, shape index: {}]   ;;  %s3792_s10 = inlined_call_operand.vmem [shape: f32[1,32], index: 10, kind: input, shape index: {}]   ;;  %s3793_s11 = inlined_call_operand.hbm [shape: f32[32,32], index: 11, kind: input, shape index: {}]   ;;  %s3794_s12 = inlined_call_operand.vmem [shape: f32[1,32], index: 12, kind: input, shape index: {}]   ;;  %s3795_s13 = inlined_call_operand.vmem [shape: f32[1,32], index: 13, kind: input, shape index: {}]   ;;  %s3796_s14 = inlined_call_operand.vmem [shape: f32[1,32], index: 14, kind: input, shape index: {}]   ;;  %s3797_s15 = inlined_call_operand.hbm [shape: f32[2,8,32], index: 15, kind: output, shape index: {}]  }
   0x1   :  { %3818 = sst [smem:[#allocation31_spill]] %s3785_s3 }
   0x2   :  { %3819 = sst [smem:[#allocation32_spill]] %s3787_s5 }
   0x3   :  { %3820 = sst [smem:[#allocation33_spill]] %s3788_s6 }
   0x4   :  { %3821 = sst [smem:[#allocation34_spill]] %s3791_s9 }
   0x5   :  { %3822 = sst [smem:[#allocation35_spill]] %s3792_s10 }
   0x6   :  { %3823 = sst [smem:[#allocation36_spill]] %s3794_s12 }
   0x7   :  { %3824 = sst [smem:[#allocation37_spill]] %s3795_s13 }
   0x8   :  { %3825 = sst [smem:[#allocation38_spill]] %s3796_s14 }
   0x9   :  { %3826 = sst [smem:[#allocation39_spill]] %s3797_s15 }
   0xa   :  { %20 = vsyncpa [#allocation4], 0 }
   0xb   :  { %22 = vsyncpa [#allocation4 + $0x1], 0 }
   0xc   :  { %23 = vsyncpa [#allocation7], 0 }
   0xd   :  { %25 = vsyncpa [#allocation7 + $0x1], 0 }
   0xe   :  { %26 = vsyncpa [#allocation10], 0 }
   0xf   :  { %28 = vsyncpa [#allocation10 + $0x1], 0 }
  0x10   :  { %29 = vsyncpa [#allocation13], 0 }
  0x11   :  { %30 = vsyncpa [#allocation16], 0 }
  0x12   :  { %31 = vsyncpa [#allocation5], 0 }
  0x13   :  { %33 = vsyncpa [#allocation5 + $0x1], 0  ;;  %s3250_s18 = smov 0   ;;  %s3252_s19 = smov 0  }
  0x14   :  { %s3254_s20 = smov 0   ;;  %s3256_s21 = smov 0  }
  0x15 LB: > { %3827 = sst [smem:[#allocation25_spill]] %s3136_s18  ;;  %s3271_s22 = sadd.s32 4294967295, %s3148_s21   ;;  %s3148_s21 = sphi %s3256_s21, %s3869_s21   ;;  %s3144_s20 = sphi %s3254_s20, %s3871_s20   ;;  %s3140_s19 = sphi %s3252_s19, %s3873_s19   ;;  %s3136_s18 = sphi %s3250_s18, %s3872_s18  }
  0x16   : > { %3828 = sst [smem:[#allocation26_spill]] %s3144_s20  ;;  %s2434_s23 = sadd.s32 4294967294, %s3148_s21  }
  0x17   : > { %p59_p0 = scmp.ne.s32.totalorder %s3140_s19, %s3136_s18  ;;  %p3810_p1 = scmp.eq.s32.totalorder %s3271_s22, 0 }
  0x18   : > { %p397_p2 = scmp.eq.s32.totalorder %s3271_s22, 1  ;;  %p403_p3 = scmp.eq.s32.totalorder %s2434_s23, 1 }
  0x19   : > { %p3280_p4 = por %p3810_p1, %p59_p0  ;;  %p2435_p5 = scmp.ge.s32.totalorder %s3148_s21, 1 }
  0x1a   : > { %p3285_p6 = por %p403_p3, %p59_p0  ;;  %p410_p7 = scmp.lt.s32.totalorder %s3148_s21, 3 }
  0x1b   : > { %s3829_s24 = scalar_select %p3280_p4, 1, 0 }
  0x1c   : > { %s3830_s25 = scalar_select %p3285_p6, 1, 0 }
  0x1d   : > { %p3290_p8 = pnand %p2435_p5, %p410_p7  ;;  %s3150_s27 = smov [#allocation11]  }
  0x1e   : > { %3831 = sst [smem:[#allocation27_spill]] %s3830_s25  ;;  %s422_s28 = sshll.u32 %s3150_s27, 4  ;;  %s423_s28 = int_to_ptr.vmem [resolvable:$true] %s422_s28 }
  0x1f   : > { %s3832_s26 = scalar_select %p3290_p8, 1, 0 }
  0x20   : > { %p2736_p9 = pneg %p3290_p8  ;;  %s3151_s30 = smov [#allocation12]  }
  0x21   : > { %s435_s16 = sshll.u32 %s3151_s30, 4  ;;  %s2859_s17 = scalar_lea.vmem %s423_s28, 512  ;;  %s436_s16 = int_to_ptr.vmem [resolvable:$true] %s435_s16 }
  0x22   : > { %p3299_p11 = pnand %p2736_p9, %p3810_p1  ;;  %p2860_p13 = scmp.ne.s32.totalorder %s423_s28, %s2859_s17 }
  0x23   : > { %p2867_p5 = scmp.lt.s32.totalorder %s423_s28, %s423_s28  ;;  %p2868_p7 = scmp.lt.s32.totalorder %s2859_s17, %s2859_s17 }
  0x24   : > { %s3833_s29 = scalar_select %p3299_p11, 1, 0 }
  0x25   : > { %p3811_p12 = pneg %p3299_p11  ;;  %p2869_p10 = por %p2868_p7, %p2867_p5 }
  0x27   : > { %p2862_p0 = pnand %p2860_p13, %p3811_p12 }
  0x29   : > { %p2863_p3 = pneg %p2862_p0 }
  0x2b   : > { %p2870_p9 = pnand %p2869_p10, %p2863_p3 }
  0x2d   : > { %2873 = shalt.err (!%p2870_p9)
}
  0x2e   : > { %s3801_s23 = smov 128   ;;  %s3803_s27 = smov 8  }
  0x2f   : > { %s3834_s5 = sld [smem:[#allocation32_spill]]  ;;  %s2885_s18 = scalar_lea.vmem %s436_s16, 512 }
  0x30   : > { %p2886_p13 = scmp.ne.s32.totalorder %s436_s16, %s2885_s18  ;;  %p2893_p10 = scmp.lt.s32.totalorder %s436_s16, %s436_s16 }
  0x31   : > { %p2894_p3 = scmp.lt.s32.totalorder %s2885_s18, %s2885_s18 }
  0x32   : > { %p2888_p0 = pnand %p2886_p13, %p3811_p12 }
  0x33   : > { %p2895_p7 = por %p2894_p3, %p2893_p10 }
  0x34   : > { %p2889_p5 = pneg %p2888_p0 }
  0x35   : > { %2739 = dma.hbm_to_vmem [thread:$0]  (!%p3299_p11), %s3834_s5, 512, %s423_s28, [#allocation10], %s3801_s23, %s3801_s23, %s3803_s27  }
  0x36   : > { %p2896_p9 = pnand %p2895_p7, %p2889_p5 }
  0x38   : > { %2899 = shalt.err (!%p2896_p9)
}
  0x39   : > { %s3835_s6 = sld [smem:[#allocation33_spill]]  ;;  %s3328_s18 = sadd.s32 1, %s3148_s21  }
  0x3a   : > { %3836 = sst [smem:[#allocation28_spill]] %s3328_s18  ;;  %s46_s25 = sadd.s32 1, %s3144_s20 }
  0x3b   : > { %s43_s28 = ssub.s32 %s3148_s21, %s3328_s18  ;;  %p53_p13 = scmp.ne.s32.totalorder %s3144_s20, %s3140_s19 }
  0x3c   : > { %p44_p0 = scmp.eq.s32.totalorder %s43_s28, 0  ;;  %p54_p5 = scmp.eq.s32.totalorder %s3148_s21, 0 }
  0x3d   : > { %p3338_p10 = por %p397_p2, %p53_p13  ;;  %p2770_p3 = scmp.lt.s32.totalorder %s3148_s21, 2 }
  0x3e   : > { %s3344_s30 = scalar_select %p44_p0, %s3144_s20, %s46_s25  }
  0x3f   : > { %2742 = dma.hbm_to_vmem [thread:$0]  (!%p3299_p11), %s3835_s6, 512, %s436_s16, [#allocation13], %s3801_s23, %s3801_s23, %s3803_s27  }
  0x40   : > { %s3837_s15 = scalar_select %p3338_p10, 1, 0 }
  0x41   : > { %3839 = sst [smem:[#allocation30_spill]] %s3344_s30  ;;  %p55_p7 = por %p54_p5, %p53_p13 }
  0x42   : > { %3838 = sst [smem:[#allocation29_spill]] %s3837_s15  ;;  %s3347_s17 = sand.u32 1, %s3144_s20  }
  0x43   : > { %s3350_s16 = sshll.u32 %s3347_s17, 3  ;;  %s3353_s23 = sshll.u32 %s3148_s21, 7 }
  0x44   : > { %p3355_p9 = pnand %p2770_p3, %p55_p7  ;;  %s3812_s27 = sand.u32 1, %s3148_s21  }
  0x45   : > { %s3364_s25 = scalar_lea.hbm %s3783_s1, %s3353_s23  ;;  %s515_s30 = scalar_lea.vmem [#allocation6], %s3350_s16 }
  0x46   : > { %s522_s20 = sshll.u32 %s515_s30, 4  ;;  %s3369_s18 = scalar_lea.sflag [#allocation7], %s3812_s27  ;;  %s523_s20 = int_to_ptr.vmem [resolvable:$true] %s522_s20 }
  0x47   : > { %s2900_s14 = scalar_lea.hbm %s3364_s25, 128  ;;  %p3375_p13 = pneg %p3355_p9 }
  0x48   : > { %p2901_p2 = scmp.ne.s32.totalorder %s3364_s25, %s2900_s14  ;;  %s2905_s15 = scalar_lea.hbm %s3783_s1, 256 }
  0x49   : > { %p2906_p3 = scmp.lt.s32.totalorder %s3364_s25, %s3783_s1  ;;  %p2907_p7 = scmp.lt.s32.totalorder %s2905_s15, %s2900_s14 }
  0x4a   : > { %p2903_p0 = pnand %p3375_p13, %p2901_p2 }
  0x4b   : > { %p2908_p1 = por %p2907_p7, %p2906_p3 }
  0x4c   : > { %p2904_p5 = pneg %p2903_p0 }
  0x4e   : > { %p2909_p12 = pnand %p2908_p1, %p2904_p5 }
  0x50   : > { %2912 = shalt.err (!%p2909_p12)
}
  0x51   : > { %s2913_s27 = scalar_lea.vmem %s523_s20, 128  ;;  %s3154_s10 = smov [#allocation6]  }
  0x52   : > { %p2914_p6 = scmp.ne.s32.totalorder %s523_s20, %s2913_s27  ;;  %s2918_s9 = sshll.u32 %s3154_s10, 4  ;;  %s2919_s9 = int_to_ptr.vmem [resolvable:$false] %s2918_s9 }
  0x53   : > { %s2920_s3 = scalar_lea.vmem %s2919_s9, 256  ;;  %p2921_p2 = scmp.lt.s32.totalorder %s523_s20, %s2919_s9 }
  0x54   : > { %p2916_p10 = pnand %p2914_p6, %p3375_p13  ;;  %p2922_p0 = scmp.lt.s32.totalorder %s2920_s3, %s2913_s27 }
  0x56   : > { %p2917_p4 = pneg %p2916_p10  ;;  %p2923_p8 = por %p2922_p0, %p2921_p2 }
  0x58   : > { %p2924_p11 = pnand %p2923_p8, %p2917_p4 }
  0x5a   : > { %2927 = shalt.err (!%p2924_p11)
}
  0x5b   : > { %2755 = dma.hbm_to_vmem [thread:$0]  (!%p3355_p9), %s3364_s25, 128, %s523_s20, %s3369_s18  }
  0x5c   : > { %s3155_s12 = smov [#allocation14]   ;;  %s3156_s15 = smov [#allocation15]  }
  0x5d   : > { %s448_s14 = sshll.u32 %s3155_s12, 4  ;;  %s470_s5 = sshll.u32 %s3156_s15, 4  ;;  %s449_s14 = int_to_ptr.vmem [resolvable:$true] %s448_s14  ;;  %s471_s5 = int_to_ptr.vmem [resolvable:$true] %s470_s5 }
  0x5e   : > { %s2939_s6 = scalar_lea.vmem %s449_s14, 512  ;;  %p3842_p6 = scmp.ne.s32.totalorder %s3833_s29, 0 }
  0x5f   : > { %p2940_p1 = scmp.ne.s32.totalorder %s449_s14, %s2939_s6  ;;  %p2947_p3 = scmp.lt.s32.totalorder %s449_s14, %s449_s14 }
  0x60   : > { %p3843_p12 = pneg %p3842_p6  ;;  %p2948_p4 = scmp.lt.s32.totalorder %s2939_s6, %s2939_s6 }
  0x62   : > { %p2942_p10 = pnand %p2940_p1, %p3843_p12  ;;  %p2949_p8 = por %p2948_p4, %p2947_p3 }
  0x64   : > { %p2943_p5 = pneg %p2942_p10 }
  0x66   : > { %p2950_p11 = pnand %p2949_p8, %p2943_p5 }
  0x68   : > { %2953 = shalt.err (!%p2950_p11)
}
  0x69   : > { %s3844_s3 = smov 8   ;;  %s3845_s9 = smov 128  }
  0x6a   : > { %2745 = dma.hbm_to_vmem [thread:$0]  (!%p3842_p6), %s3789_s7, 512, %s449_s14, [#allocation13], %s3845_s9, %s3845_s9, %s3844_s3  }
  0x6b   : > { %s2965_s27 = scalar_lea.vmem %s471_s5, 512  ;;  %p3846_p2 = pmov %p3843_p12 }
  0x6c   : > { %p2966_p7 = scmp.ne.s32.totalorder %s471_s5, %s2965_s27  ;;  %p2973_p12 = scmp.lt.s32.totalorder %s471_s5, %s471_s5 }
  0x6d   : > { %p2974_p10 = scmp.lt.s32.totalorder %s2965_s27, %s2965_s27 }
  0x6e   : > { %p2968_p0 = pnand %p2966_p7, %p3846_p2 }
  0x6f   : > { %p2975_p5 = por %p2974_p10, %p2973_p12 }
  0x70   : > { %p2969_p1 = pneg %p2968_p0 }
  0x72   : > { %p2976_p3 = pnand %p2975_p5, %p2969_p1 }
  0x74   : > { %2979 = shalt.err (!%p2976_p3)
}
  0x75   : > { %2748 = dma.hbm_to_vmem [thread:$0]  (!%p3842_p6), %s3793_s11, 512, %s471_s5, [#allocation16], %s3845_s9, %s3845_s9, %s3844_s3  }
  0x76   : > { %s3420_s15 = scalar_lea.hbm %s3782_s0, %s3353_s23  ;;  %s497_s29 = scalar_lea.vmem [#allocation3], %s3350_s16 }
  0x77   : > { %s504_s6 = sshll.u32 %s497_s29, 4  ;;  %s3427_s27 = scalar_lea.hbm %s3784_s2, %s3353_s23  ;;  %s505_s6 = int_to_ptr.vmem [resolvable:$true] %s504_s6 }
  0x78   : > { %s494_s25 = scalar_lea.sflag [#allocation4], %s3347_s17  ;;  %s2980_s30 = scalar_lea.hbm %s3420_s15, 128 }
  0x79   : > { %p2981_p4 = scmp.ne.s32.totalorder %s3420_s15, %s2980_s30  ;;  %s2985_s9 = scalar_lea.hbm %s3782_s0, 256 }
  0x7a   : > { %p2986_p11 = scmp.lt.s32.totalorder %s3420_s15, %s3782_s0  ;;  %p2987_p7 = scmp.lt.s32.totalorder %s2985_s9, %s2980_s30 }
  0x7b   : > { %p2983_p6 = pnand %p2981_p4, %p3375_p13 }
  0x7c   : > { %p2988_p2 = por %p2987_p7, %p2986_p11 }
  0x7d   : > { %p2984_p8 = pneg %p2983_p6 }
  0x7f   : > { %p2989_p0 = pnand %p2988_p2, %p2984_p8 }
  0x81   : > { %2992 = shalt.err (!%p2989_p0)
}
  0x82   : > { %s2993_s23 = scalar_lea.vmem %s505_s6, 128  ;;  %s3157_s29 = smov [#allocation3]  }
  0x83   : > { %p2994_p1 = scmp.ne.s32.totalorder %s505_s6, %s2993_s23  ;;  %s2998_s10 = sshll.u32 %s3157_s29, 4  ;;  %s2999_s10 = int_to_ptr.vmem [resolvable:$false] %s2998_s10 }
  0x84   : > { %s3000_s20 = scalar_lea.vmem %s2999_s10, 256  ;;  %p3001_p5 = scmp.lt.s32.totalorder %s505_s6, %s2999_s10 }
  0x85   : > { %p2996_p12 = pnand %p2994_p1, %p3375_p13  ;;  %p3002_p3 = scmp.lt.s32.totalorder %s3000_s20, %s2993_s23 }
  0x87   : > { %p2997_p10 = pneg %p2996_p12  ;;  %p3003_p4 = por %p3002_p3, %p3001_p5 }
  0x89   : > { %p3004_p6 = pnand %p3003_p4, %p2997_p10 }
  0x8b   : > { %3007 = shalt.err (!%p3004_p6)
}
  0x8c   : > { %2752 = dma.hbm_to_vmem [thread:$0]  (!%p3355_p9), %s3420_s15, 128, %s505_s6, %s494_s25  }
  0x8d   : > { %s533_s30 = scalar_lea.vmem [#allocation8], %s3350_s16  ;;  %s2447_s3 = sshll.u32 %s3148_s21, 4 }
  0x8e   : > { %s540_s5 = sshll.u32 %s533_s30, 4  ;;  %s3008_s9 = scalar_lea.hbm %s3427_s27, 128  ;;  %s541_s5 = int_to_ptr.vmem [resolvable:$true] %s540_s5 }
  0x8f   : > { %p3009_p8 = scmp.ne.s32.totalorder %s3427_s27, %s3008_s9  ;;  %s3013_s23 = scalar_lea.hbm %s3784_s2, 256 }
  0x90   : > { %p3014_p2 = scmp.lt.s32.totalorder %s3427_s27, %s3784_s2  ;;  %p3015_p0 = scmp.lt.s32.totalorder %s3013_s23, %s3008_s9 }
  0x91   : > { %p3011_p11 = pnand %p3009_p8, %p3375_p13 }
  0x92   : > { %p3016_p1 = por %p3015_p0, %p3014_p2 }
  0x93   : > { %p3012_p7 = pneg %p3011_p11 }
  0x95   : > { %p3017_p12 = pnand %p3016_p1, %p3012_p7 }
  0x97   : > { %3020 = shalt.err (!%p3017_p12)
}
  0x98   : > { %s3021_s16 = scalar_lea.vmem %s541_s5, 128  ;;  %s3158_s15 = smov [#allocation8]  }
  0x99   : > { %p3022_p10 = scmp.ne.s32.totalorder %s541_s5, %s3021_s16  ;;  %s3026_s6 = sshll.u32 %s3158_s15, 4  ;;  %s3027_s6 = int_to_ptr.vmem [resolvable:$false] %s3026_s6 }
  0x9a   : > { %s3028_s25 = scalar_lea.vmem %s3027_s6, 256  ;;  %p3029_p4 = scmp.lt.s32.totalorder %s541_s5, %s3027_s6 }
  0x9b   : > { %p3024_p5 = pnand %p3022_p10, %p3375_p13  ;;  %p3030_p6 = scmp.lt.s32.totalorder %s3028_s25, %s3021_s16 }
  0x9d   : > { %p3025_p3 = pneg %p3024_p5  ;;  %p3031_p8 = por %p3030_p6, %p3029_p4 }
  0x9f   : > { %p3032_p11 = pnand %p3031_p8, %p3025_p3 }
  0xa1   : > { %3035 = shalt.err (!%p3032_p11)
}
  0xa2   : > { %2758 = dma.hbm_to_vmem [thread:$0]  (!%p3355_p9), %s3427_s27, 128, %s541_s5, %s3369_s18  }
  0xa3   : > { %s3468_s9 = scalar_lea.hbm %s3786_s4, %s2447_s3  ;;  %s557_s12 = scalar_lea.vmem [#allocation9], %s3347_s17 }
  0xa4   : > { %s564_s14 = sshll.u32 %s557_s12, 4  ;;  %s3847_s23 = sand.u32 1, %s3148_s21   ;;  %s565_s14 = int_to_ptr.vmem [resolvable:$true] %s564_s14 }
  0xa5   : > { %s555_s29 = scalar_lea.sflag [#allocation10], %s3847_s23  ;;  %s3036_s10 = scalar_lea.hbm %s3468_s9, 16 }
  0xa6   : > { %p3037_p7 = scmp.ne.s32.totalorder %s3468_s9, %s3036_s10  ;;  %s3041_s27 = scalar_lea.hbm %s3786_s4, 32 }
  0xa7   : > { %p3042_p1 = scmp.lt.s32.totalorder %s3468_s9, %s3786_s4  ;;  %p3043_p12 = scmp.lt.s32.totalorder %s3041_s27, %s3036_s10 }
  0xa8   : > { %p3039_p2 = pnand %p3037_p7, %p3375_p13 }
  0xa9   : > { %p3044_p10 = por %p3043_p12, %p3042_p1 }
  0xaa   : > { %p3040_p0 = pneg %p3039_p2 }
  0xac   : > { %p3045_p5 = pnand %p3044_p10, %p3040_p0 }
  0xae   : > { %3048 = shalt.err (!%p3045_p5)
}
  0xaf   : > { %s3049_s17 = scalar_lea.vmem %s565_s14, 16  ;;  %s3159_s15 = smov [#allocation9]  }
  0xb0   : > { %p3050_p3 = scmp.ne.s32.totalorder %s565_s14, %s3049_s17  ;;  %s3054_s6 = sshll.u32 %s3159_s15, 4  ;;  %s3055_s6 = int_to_ptr.vmem [resolvable:$false] %s3054_s6 }
  0xb1   : > { %s3056_s25 = scalar_lea.vmem %s3055_s6, 32  ;;  %p3057_p8 = scmp.lt.s32.totalorder %s565_s14, %s3055_s6 }
  0xb2   : > { %p3052_p4 = pnand %p3050_p3, %p3375_p13  ;;  %p3058_p11 = scmp.lt.s32.totalorder %s3056_s25, %s3049_s17 }
  0xb4   : > { %p3053_p6 = pneg %p3052_p4  ;;  %p3059_p7 = por %p3058_p11, %p3057_p8 }
  0xb6   : > { %p3060_p2 = pnand %p3059_p7, %p3053_p6 }
  0xb8   : > { %3063 = shalt.err (!%p3060_p2)
}
  0xb9   : > { %2761 = dma.hbm_to_vmem [thread:$0]  (!%p3355_p9), %s3468_s9, 16, %s565_s14, %s555_s29  }
  0xba   : > { %p3848_p0 = scmp.ne.s32.totalorder %s3832_s26, 0 }
  0xbb   : > { %s3492_s13 = sand.u32 (!%p3848_p0), 1, %s3140_s19   ;;  %p3849_p13 = scmp.ne.s32.totalorder (!%p3848_p0), %s3829_s24, 0 }
  0xbc   : > { %573 = sbr.rel (%p3848_p0) target bundleno = 2714 (0xa9a), region = 80  ;;  %s3495_s20 = sshll.u32 (!%p3848_p0), %s3492_s13, 3 }
  0xbd   : > { %s576_s30 = scalar_lea.sflag (!%p3848_p0), [#allocation4], %s3492_s13  ;;  %s579_s12 = scalar_lea.vmem (!%p3848_p0), [#allocation3], %s3495_s20 }
  0xc1   : > { %3107 = dma.done.wait (%p3849_p13), %s576_s30, 128  }
  0xc2   : > { %3109 = vsyncadd (%p3849_p13), %s576_s30, 4294967168  ;;  %s584_s26 = sand.u32 1, %s3271_s22   ;;  %s588_s9 = scalar_lea.vmem [#allocation6], %s3495_s20 }
  0xc3   : > { %s585_s28 = scalar_lea.sflag [#allocation7], %s584_s26 }
  0xc4   : > { %3111 = dma.done.wait (%p3849_p13), %s585_s28, 256  }
  0xc5   : > { %3113 = vsyncadd (%p3849_p13), %s585_s28, 4294967040  ;;  %s597_s14 = scalar_lea.vmem [#allocation8], %s3495_s20  ;;  %s603_s23 = scalar_lea.sflag [#allocation10], %s584_s26 }
  0xc6   : > { %s605_s29 = scalar_lea.vmem [#allocation9], %s3492_s13 }
  0xc7   : > { %3115 = dma.done.wait (%p3849_p13), %s603_s23, 16  }
  0xc8   : > { %3117 = vsyncadd (%p3849_p13), %s603_s23, 4294967280  ;;  %p3850_p9 = scmp.eq.s32.totalorder %s3271_s22, 0 }
  0xca   : > { %3119 = dma.done.wait (%p3850_p9), [#allocation10], 512   ;;  %p3851_p1 = pmov %p3850_p9 }
  0xcc   : > { %3121 = vsyncadd (%p3851_p1), [#allocation10], 4294966784  ;;  %p3852_p12 = pmov %p3851_p1 }
  0xcd   : > { %p3853_p10 = pmov %p3851_p1 }
  0xce   : > { %3123 = dma.done.wait (%p3852_p12), [#allocation13], 1024  }
  0xcf   : > { %3125 = vsyncadd (%p3853_p10), [#allocation13], 4294966272  ;;  %p3854_p5 = pmov %p3851_p1 }
  0xd0   : > { %p3855_p3 = pmov %p3851_p1 }
  0xd1   : > { %3127 = dma.done.wait (%p3854_p5), [#allocation16], 512  }
  0xd2   : > { %3129 = vsyncadd (%p3855_p3), [#allocation16], 4294966784  ;;  %v3160_v0 = vmov 0.0   ;;  %vm3161_vm0 = vmmov 0   ;;  %v696_v1 = vld [vmem:[#allocation11 + $0x18] sm:$0xff]  ;;  %v695_v2 = vld [vmem:[#allocation11 + $0x10] sm:$0xff] }
  0xd3   : > { %2560 = vmatprep.subr.mxu0 %v3160_v0  ;;  %2571 = vmatprep.subr.mxu1 %v3160_v0  ;;  %v700_v3 = vld [vmem:[#allocation12 + $0x18] sm:$0xff]  ;;  %v694_v4 = vld [vmem:[#allocation11 + $0x8] sm:$0xff]  ;;  %v699_v5 = vld [vmem:[#allocation12 + $0x10] sm:$0xff]  ;;  %vm720_vm1 = vcmask 261120   ;;  %p686_p4 = scmp.lt.s32.totalorder %s3271_s22, 1  ;;  %v3162_v38 = vmov 0  }
  0xd4   : > { %2568 = vmatprep.mubr.msk.f32.mxu0 %vm3161_vm0, %v3160_v0  ;;  %2579 = vmatprep.mubr.msk.f32.mxu1 %vm3161_vm0, %v3160_v0  ;;  %v698_v6 = vld [vmem:[#allocation12 + $0x8] sm:$0xff]  ;;  %v693_v7 = vld [vmem:[#allocation11] sm:$0xff]  ;;  %v704_v11 = vld [vmem:[#allocation14 + $0x18] sm:$0xff]  ;;  %s3858_s10 = sld [smem:[#allocation35_spill]]  ;;  %vm1420_vm2 = vcmask 64512   ;;  %s3163_s16 = smov 120  }
  0xd5   : > { %2561 = vmatpush3.msra.mxu0 %v696_v1  ;;  %2572 = vmatpush3.msra.mxu1 %v700_v3  ;;  %v690_v8 = vld [vmem:[%s579_s12] sm:$0xff]  ;;  %v697_v9 = vld [vmem:[#allocation12] sm:$0xff]  ;;  %s687_s15 = scalar_select %p686_p4, %s3271_s22, 1  ;;  %vm1768_vm7 = vcmask 130112   ;;  %vm1947_vm8 = vcmask 195712   ;;  %vm2126_vm9 = vcmask 261312  }
  0xd6   : > { %2562 = vmatprep.subr.mxu0 %v3160_v0  ;;  %2573 = vmatprep.subr.mxu1 %v3160_v0  ;;  %v691_v10 = vld [vmem:[%s588_s9] sm:$0xff]  ;;  %v703_v12 = vld [vmem:[#allocation14 + $0x10] sm:$0xff]  ;;  %s3856_s12 = sld [smem:[#allocation31_spill]]  ;;  %s3164_s18 = smov 104  }
  0xd7   : > { %2563 = vmatpush3.msra.mxu0 %v695_v2  ;;  %2574 = vmatpush3.msra.mxu1 %v699_v5  ;;  %v3549_v13 = vld [vmem:[%s3790_s8 + $0x18] sm:$0xff]  ;;  %v702_v14 = vld [vmem:[#allocation14 + $0x8] sm:$0xff]  ;;  %v3558_v15 = vld [vmem:[%s3790_s8 + $0x10] sm:$0xff]  ;;  %s2457_s6 = sshll.u32 %s687_s15, 3  ;;  %s3166_s27 = smov 8  }
  0xd8   : > { %2564 = vmatprep.subr.mxu0 %v3160_v0  ;;  %2575 = vmatprep.subr.mxu1 %v3160_v0  ;;  %v701_v16 = vld [vmem:[#allocation14] sm:$0xff]  ;;  %v3566_v17 = vld [vmem:[%s3790_s8 + $0x8] sm:$0xff]  ;;  %s3167_s5 = smov 16   ;;  %s3168_s3 = smov 24  }
  0xd9   : > { %2565 = vmatpush3.msra.mxu0 %v694_v4  ;;  %2576 = vmatpush3.msra.mxu1 %v698_v6  ;;  %v692_v18 = vld [vmem:[%s597_s14] sm:$0xff]  ;;  %v3576_v19 = vld [vmem:[%s3790_s8] sm:$0xff]  ;;  %s3857_s14 = sld [smem:[#allocation34_spill]]  ;;  %s2491_s23 = sshll.u32 %s3271_s22, 7 }
  0xda   : > { %2566 = vmatprep.subr.mxu0 %v3160_v0  ;;  %2577 = vmatprep.subr.mxu1 %v3160_v0  ;;  %v2464_v55 = vld [vmem:[%s3858_s10] ss:$0 sm:$0xff]  ;;  %s3860_s25 = sld [smem:[#allocation29_spill]]  ;;  %s685_s24 = scalar_lea.vmem [#allocation17], %s3495_s20 }
  0xdb   : > { %2567 = vmatpush3.msra.mxu0 %v693_v7  ;;  %2578 = vmatpush3.msra.mxu1 %v697_v9  ;;  %v2469_v63 = vld [vmem:[%s605_s29] ss:$0 sm:$0xff]  ;;  %s3165_s29 = smov 112   ;;  %s2251_s10 = sshll.u32 %s685_s24, 4  ;;  %s2252_s10 = int_to_ptr.vmem [resolvable:$true] %s2251_s10 }
  0xdc   : > { %2569 = vmatmul.mubr.msk.f32.vlgmr.msra.gmra.mxu0 %vm720_vm1, %v690_v8  ;;  %2580 = vmatmul.mubr.msk.f32.vlgmr.msra.gmra.mxu1 %vm720_vm1, %v691_v10  ;;  %s689_s26 = scalar_lea.vmem %s3856_s12, %s2457_s6  ;;  %s3859_s6 = sld [smem:[#allocation36_spill]] }
  0xdd   : > { %2582 = vmatprep.subr.mxu0 %v3160_v0  ;;  %2590 = vmatprep.mubr.msk.f32.mxu0 %vm3161_vm0, %v3160_v0  ;;  %v709_v39 = vld [vmem:[%s689_s26] sm:$0xff]  ;;  %s3861_s26 = sld [smem:[#allocation37_spill]]  ;;  %s3169_s17 = smov [#allocation17]  }
  0xde   : > { %2583 = vmatpush3.msra.mxu0 %v704_v11  ;;  %2593 = vmatprep.subr.mxu1 %v3160_v0  ;;  %s3068_s15 = sshll.u32 %s3169_s17, 4  ;;  %s3069_s15 = int_to_ptr.vmem [resolvable:$false] %s3068_s15 }
  0xdf   : > { %2584 = vmatprep.subr.mxu0 %v3160_v0  ;;  %2594 = vmatpush3.msra.mxu1 %v3549_v13  ;;  %v2463_v52 = vld [vmem:[%s3857_s14] ss:$0 sm:$0xff]  ;;  %s3862_s14 = sld [smem:[#allocation38_spill]]  ;;  %s3070_s22 = scalar_lea.vmem %s3069_s15, 256 }
  0xe0   : > { %2585 = vmatpush3.msra.mxu0 %v703_v12  ;;  %2595 = vmatprep.subr.mxu1 %v3160_v0  ;;  %p3864_p8 = scmp.ne.s32.totalorder %s3860_s25, 0  ;;  %p3071_p2 = scmp.lt.s32.totalorder %s2252_s10, %s3069_s15 }
  0xe1   : > { %2586 = vmatprep.subr.mxu0 %v3160_v0  ;;  %2596 = vmatpush3.msra.mxu1 %v3558_v15 }
  0xe2   : > { %2587 = vmatpush3.msra.mxu0 %v702_v14  ;;  %2597 = vmatprep.subr.mxu1 %v3160_v0 }
  0xe3   : > { %2588 = vmatprep.subr.mxu0 %v3160_v0  ;;  %2598 = vmatpush3.msra.mxu1 %v3566_v17 }
  0xe4   : > { %2589 = vmatpush3.msra.mxu0 %v701_v16  ;;  %2599 = vmatprep.subr.mxu1 %v3160_v0 }
  0xe5   : > { %2591 = vmatmul.mubr.msk.f32.vlgmr.msra.gmra.mxu0 %vm720_vm1, %v692_v18  ;;  %2600 = vmatpush3.msra.mxu1 %v3576_v19 }
  0xe6   : > { %2601 = vmatprep.mubr.msk.f32.mxu1 %vm3161_vm0, %v3160_v0  ;;  %2615 = vmatprep.subr.mxu1 %v3160_v0 }
  0xe7   : > { %2604 = vmatprep.subr.mxu0 %v3160_v0  ;;  %2612 = vmatprep.mubr.msk.f32.mxu0 %vm3161_vm0, %v3160_v0 }
  0xe8   : > { %2605 = vmatpush3.msra.mxu0 %v3549_v13  ;;  %2823 = vset.pattern.permute.xlu0 %v3162_v38 }
  0xe9   : > { %2606 = vmatprep.subr.mxu0 %v3160_v0  ;;  %1410 = vperm.xlu0 %2823, %v709_v39  }
  0xea   : > { %2607 = vmatpush3.msra.mxu0 %v3558_v15 }
  0xeb   : > { %2608 = vmatprep.subr.mxu0 %v3160_v0 }
  0xec   : > { %2609 = vmatpush3.msra.mxu0 %v3566_v17 }
  0xed   : > { %2610 = vmatprep.subr.mxu0 %v3160_v0 }
  0xee   : > { %2611 = vmatpush3.msra.mxu0 %v3576_v19 }
  0xef   : > { %2626 = vmatprep.subr.mxu0 %v3160_v0 }
 0x164   : > { %v1411_v1 = vpop.permute.xlu0 %1410 }
 0x165   : > { %v3670_v2 = vmul.f32 %v2469_v63, %v1411_v1 }
 0x19c   : > { %v790_v20 = vpop.f32.mrf.mxu0  ;;  %v863_v21 = vpop.f32.mrf.mxu1 }
 0x19d   : > { %2602 = vmatmul.mubr.msk.f32.vlgmr.msra.gmra.mxu1 %vm720_vm1, %v790_v20 }
 0x19e   : > { %2616 = vmatpush3.msra.mxu1 %v3549_v13  ;;  %v2570_v22 = vpop.f32.mrf.mxu0  ;;  %2623 = vmatprep.mubr.msk.f32.mxu1 %vm3161_vm0, %v3160_v0  ;;  %v2581_v23 = vpop.f32.mrf.mxu1 }
 0x19f   : > { %2617 = vmatprep.subr.mxu1 %v3160_v0 }
 0x1a0   : > { %2618 = vmatpush3.msra.mxu1 %v3558_v15 }
 0x1a1   : > { %2619 = vmatprep.subr.mxu1 %v3160_v0 }
 0x1a2   : > { %2620 = vmatpush3.msra.mxu1 %v3566_v17 }
 0x1a3   : > { %2621 = vmatprep.subr.mxu1 %v3160_v0 }
 0x1a4   : > { %2622 = vmatpush3.msra.mxu1 %v3576_v19 }
 0x1a5   : > { %2624 = vmatmul.mubr.msk.f32.vlgmr.msra.gmra.mxu1 %vm720_vm1, %v863_v21  ;;  %2637 = vmatprep.subr.mxu1 %v3160_v0  ;;  %v936_v24 = vpop.f32.mrf.mxu0 }
 0x1a6   : > { %2638 = vmatpush3.msra.mxu1 %v3549_v13  ;;  %2645 = vmatprep.mubr.msk.f32.mxu1 %vm3161_vm0, %v3160_v0 }
 0x1a7   : > { %2639 = vmatprep.subr.mxu1 %v3160_v0  ;;  %v2592_v25 = vpop.f32.mrf.mxu0 }
 0x1a8   : > { %2640 = vmatpush3.msra.mxu1 %v3558_v15 }
 0x1a9   : > { %2641 = vmatprep.subr.mxu1 %v3160_v0 }
 0x1aa   : > { %2642 = vmatpush3.msra.mxu1 %v3566_v17 }
 0x1ab   : > { %2643 = vmatprep.subr.mxu1 %v3160_v0 }
 0x1ac   : > { %2644 = vmatpush3.msra.mxu1 %v3576_v19 }
 0x1ad   : > { %2646 = vmatmul.mubr.msk.f32.vlgmr.msra.gmra.mxu1 %vm720_vm1, %v936_v24  ;;  %2659 = vmatprep.subr.mxu1 %v3160_v0 }
 0x1ae   : > { %2661 = vmatprep.mubr.msk.f32.mxu1 %vm3161_vm0, %v3160_v0 }
 0x25d   : > { %v1009_v26 = vpop.f32.mrf.mxu1 }
 0x25e   : > { %v1013_v27 = vsub.f32 %v790_v20, %v1009_v26 }
 0x25f   : > { %v2603_v28 = vpop.f32.mrf.mxu1 }
 0x260   : > { %v1014_v29 = vmul.f32 %v1013_v27, %v1013_v27 }
 0x262   : > { %2613 = vmatmul.mubr.msk.f32.vlgmr.msra.gmra.mxu0 %vm720_vm1, %v1014_v29 }
 0x263   : > { %2627 = vmatpush3.msra.mxu0 %v3549_v13  ;;  %2634 = vmatprep.mubr.msk.f32.mxu0 %vm3161_vm0, %v3160_v0 }
 0x264   : > { %2628 = vmatprep.subr.mxu0 %v3160_v0 }
 0x265   : > { %v1173_v30 = vpop.f32.mrf.mxu1  ;;  %2629 = vmatpush3.msra.mxu0 %v3558_v15 }
 0x266   : > { %v1177_v31 = vsub.f32 %v863_v21, %v1173_v30  ;;  %2630 = vmatprep.subr.mxu0 %v3160_v0 }
 0x267   : > { %v2625_v32 = vpop.f32.mrf.mxu1  ;;  %2631 = vmatpush3.msra.mxu0 %v3566_v17 }
 0x268   : > { %v1178_v33 = vmul.f32 %v1177_v31, %v1177_v31  ;;  %2632 = vmatprep.subr.mxu0 %v3160_v0 }
 0x269   : > { %2633 = vmatpush3.msra.mxu0 %v3576_v19 }
 0x26a   : > { %2635 = vmatmul.mubr.msk.f32.vlgmr.msra.gmra.mxu0 %vm720_vm1, %v1178_v33  ;;  %2648 = vmatprep.subr.mxu0 %v3160_v0 }
 0x26b   : > { %2649 = vmatpush3.msra.mxu0 %v3549_v13  ;;  %2656 = vmatprep.mubr.msk.f32.mxu0 %vm3161_vm0, %v3160_v0 }
 0x26c   : > { %2650 = vmatprep.subr.mxu0 %v3160_v0 }
 0x26d   : > { %v1325_v34 = vpop.f32.mrf.mxu1  ;;  %2651 = vmatpush3.msra.mxu0 %v3558_v15 }
 0x26e   : > { %v1329_v35 = vsub.f32 %v936_v24, %v1325_v34  ;;  %2652 = vmatprep.subr.mxu0 %v3160_v0 }
 0x26f   : > { %2653 = vmatpush3.msra.mxu0 %v3566_v17  ;;  %v2647_v36 = vpop.f32.mrf.mxu1 }
 0x270   : > { %v1330_v37 = vmul.f32 %v1329_v35, %v1329_v35  ;;  %2654 = vmatprep.subr.mxu0 %v3160_v0 }
 0x271   : > { %2655 = vmatpush3.msra.mxu0 %v3576_v19 }
 0x272   : > { %2657 = vmatmul.mubr.msk.f32.vlgmr.msra.gmra.mxu0 %vm720_vm1, %v1330_v37  ;;  %2679 = vmatprep.subr.mxu0 %v3160_v0 }
 0x273   : > { %2681 = vmatprep.mubr.msk.f32.mxu0 %vm3161_vm0, %v3160_v0 }
 0x322   : > { %v1084_v40 = vpop.f32.mrf.mxu0 }
 0x323   : > { %v1085_v42 = vadd.f32 1e-05, %v1084_v40 }
 0x324   : > { %v2614_v41 = vpop.f32.mrf.mxu0 }
 0x325   : > { %2824 = vrsqrt.f32 %v1085_v42 }
 0x32a   : > { %v1248_v43 = vpop.f32.mrf.mxu0 }
 0x32b   : > { %v1249_v44 = vadd.f32 1e-05, %v1248_v43 }
 0x32c   : > { %v2636_v45 = vpop.f32.mrf.mxu0 }
 0x32d   : > { %2826 = vrsqrt.f32 %v1249_v44 }
 0x332   : > { %v1400_v46 = vpop.f32.mrf.mxu0  ;;  %v2825_v49 = vpop.eup %2824 }
 0x333   : > { %v1401_v47 = vadd.f32 1e-05, %v1400_v46  ;;  %v1089_v51 = vmul.f32 %v2825_v49, %v1013_v27 }
 0x334   : > { %v2658_v48 = vpop.f32.mrf.mxu0 }
 0x335   : > { %2828 = vrsqrt.f32 %v1401_v47  ;;  %v1096_v56 = vmul.f32 %v2463_v52, %v1089_v51 }
 0x337   : > { %v1103_v59 = vadd.f32 %v2464_v55, %v1096_v56 }
 0x33a   : > { %v2827_v50 = vpop.eup %2826 }
 0x33b   : > { %v1253_v53 = vmul.f32 %v2827_v50, %v1177_v31 }
 0x33d   : > { %v1254_v54 = vmul.f32 %v2463_v52, %v1253_v53 }
 0x33f   : > { %v1255_v57 = vadd.f32 %v2464_v55, %v1254_v54 }
 0x341   : > { %1592 = vrot.lane.b32.xlu1 %v1255_v57, %s3163_s16  ;;  %2660 = vmatpush3.xpose.msk.msra.mxu1 %vm1420_vm2, %v1255_v57 }
 0x342   : > { %v2829_v58 = vpop.eup %2828  ;;  %2664 = vmatprep.subr.mxu1 %v3160_v0 }
 0x343   : > { %v1405_v60 = vmul.f32 %v2829_v58, %v1329_v35 }
 0x344   : > { %2662 = vmatmul.mubr.msk.f32.vlgmr.msra.gmra.mxu1 %vm1420_vm2, %v1103_v59 }
 0x345   : > { %1590 = vrot.lane.b32.xlu1 %v1103_v59, %s3163_s16  ;;  %v1406_v61 = vmul.f32 %v2463_v52, %v1405_v60  ;;  %2666 = vmatprep.mubr.msk.f32.mxu1 %vm3161_vm0, %v3160_v0 }
 0x347   : > { %v3664_v62 = vadd.f32 %v2464_v55, %v1406_v61 }
 0x349   : > { %2665 = vmatpush3.msra.mxu1 %v3664_v62 }
 0x34a   : > { %2669 = vmatprep.subr.mxu1 %v3160_v0 }
 0x3b3   : > { %v1593_v14 = vpop.permute.xlu1 %1592 }
 0x3b7   : > { %v1591_v15 = vpop.permute.xlu1 %1590 }
 0x404   : > { %v1493_v3 = vpop.f32.mrf.mxu1 }
 0x405   : > { %v1497_v4 = vmul.f32 0.17677669, %v1493_v3 }
 0x406   : > { %v2663_v5 = vpop.f32.mrf.mxu1 }
 0x407   : > { %v1498_v6 = vmul.f32 %v1497_v4, %v3670_v2 }
 0x409   : > { %v1499_v7 = vsel %vm1420_vm2, %v1498_v6, -inf }
 0x40a   : > { %1500 = vmax.xlane.f32.xlu0 %v1499_v7 }
 0x420   : > { %1949 = vrot.lane.b32.xlu0 %v1103_v59, %s3164_s18 }
 0x493   : > { %v1501_v8 = vpop.xlane.xlu0 %1500 }
 0x494   : > { %v1502_v9 = vsub.f32 %v1498_v6, %v1501_v8 }
 0x496   : > { %v1503_v10 = vmul.f32 1.442695, %v1502_v9 }
 0x497   : > { %v1950_v23 = vpop.permute.xlu0 %1949 }
 0x498   : > { %2830 = vpow2.f32 %v1503_v10 }
 0x4a5   : > { %v2831_v11 = vpop.eup %2830 }
 0x4a6   : > { %v1505_v12 = vmul.f32 %v2831_v11, %v3670_v2 }
 0x4a8   : > { %v1506_v13 = vsel %vm1420_vm2, %v1505_v12, 0.0 }
 0x4a9   : > { %1507 = vadd.xlane.f32.xlu1 %v1506_v13 }
 0x4ba   : > { %1772 = vrot.lane.b32.xlu1 %v1255_v57, %s3165_s29 }
 0x4be   : > { %1770 = vrot.lane.b32.xlu1 %v1103_v59, %s3165_s29 }
 0x4c2   : > { %1951 = vrot.lane.b32.xlu1 %v1255_v57, %s3164_s18 }
 0x532   : > { %v1508_v16 = vpop.xlane.xlu1 %1507 }
 0x533   : > { %vm1509_vm3 = vcmp.eq.f32.partialorder %v1508_v16, 0.0 }
 0x534   : > { %v2472_v17 = vsel %vm1509_vm3, 1.0, %v3160_v0 }
 0x535   : > { %v1512_v18 = vadd.f32 %v2472_v17, %v1508_v16 }
 0x536   : > { %v1773_v19 = vpop.permute.xlu1 %1772 }
 0x537   : > { %v1513_v20 = vadd.f32 1e-20, %v1512_v18  ;;  %2680 = vmatpush3.xpose.msk.msra.mxu0 %vm1420_vm2, %v1773_v19  ;;  %v708_v19 = vld [vmem:[#allocation15 + $0x18] sm:$0xff] }
 0x538   : > { %2689 = vmatprep.subr.mxu0 %v3160_v0 }
 0x539   : > { %2832 = vrcp.f32 %v1513_v20  ;;  %v707_v20 = vld [vmem:[#allocation15 + $0x10] sm:$0xff] }
 0x53a   : > { %v1771_v21 = vpop.permute.xlu1 %1770 }
 0x53b   : > { %2682 = vmatmul.mubr.msk.f32.vlgmr.msra.gmra.mxu0 %vm1420_vm2, %v1771_v21  ;;  %v706_v21 = vld [vmem:[#allocation15 + $0x8] sm:$0xff] }
 0x53c   : > { %2691 = vmatprep.mubr.msk.f32.mxu0 %vm3161_vm0, %v3160_v0 }
 0x53e   : > { %v1952_v22 = vpop.permute.xlu1 %1951 }
 0x53f   : > { %2690 = vmatpush3.xpose.msk.msra.mxu0 %vm1420_vm2, %v1952_v22 }
 0x540   : > { %2699 = vmatprep.subr.mxu0 %v3160_v0 }
 0x542   : > { %2692 = vmatmul.mubr.msk.f32.vlgmr.msra.gmra.mxu0 %vm1420_vm2, %v1950_v23  ;;  %v705_v23 = vld [vmem:[#allocation15] sm:$0xff] }
 0x543   : > { %2707 = vmatprep.mubr.msk.f32.mxu0 %vm3161_vm0, %v3160_v0  ;;  %2700 = vmatpush3.msra.mxu0 %v708_v19 }
 0x544   : > { %2701 = vmatprep.subr.mxu0 %v3160_v0 }
 0x545   : > { %2702 = vmatpush3.msra.mxu0 %v707_v20 }
 0x546   : > { %v2833_v24 = vpop.eup %2832  ;;  %2703 = vmatprep.subr.mxu0 %v3160_v0 }
 0x547   : > { %v1515_v25 = vmul.f32 %v2833_v24, %v1505_v12  ;;  %2704 = vmatpush3.msra.mxu0 %v706_v21 }
 0x548   : > { %2705 = vmatprep.subr.mxu0 %v3160_v0 }
 0x549   : > { %2667 = vmatmul.mubr.msk.f32.vlgmr.msra.gmra.mxu1 %vm1420_vm2, %v1515_v25  ;;  %2706 = vmatpush3.msra.mxu0 %v705_v23 }
 0x54a   : > { %2670 = vmatpush3.xpose.msk.msra.mxu1 %vm1420_vm2, %v1593_v14  ;;  %2671 = vmatprep.mubr.msk.f32.mxu1 %vm3161_vm0, %v3160_v0 }
 0x54b   : > { %2674 = vmatprep.subr.mxu1 %v3160_v0 }
 0x54d   : > { %2672 = vmatmul.mubr.msk.f32.vlgmr.msra.gmra.mxu1 %vm1420_vm2, %v1591_v15 }
 0x54e   : > { %2676 = vmatprep.mubr.msk.f32.mxu1 %vm3161_vm0, %v3160_v0 }
 0x5fb   : > { %v1844_v26 = vpop.f32.mrf.mxu0 }
 0x5fc   : > { %v1848_v27 = vmul.f32 0.17677669, %v1844_v26 }
 0x5fd   : > { %v2683_v28 = vpop.f32.mrf.mxu0 }
 0x5fe   : > { %v1849_v29 = vmul.f32 %v1848_v27, %v3670_v2 }
 0x600   : > { %v1850_v30 = vsel %vm1420_vm2, %v1849_v29, -inf }
 0x601   : > { %1851 = vmax.xlane.f32.xlu0 %v1850_v30 }
 0x602   : > { %v2023_v31 = vpop.f32.mrf.mxu0 }
 0x603   : > { %v2027_v36 = vmul.f32 0.17677669, %v2023_v31 }
 0x604   : > { %v2693_v32 = vpop.f32.mrf.mxu0 }
 0x605   : > { %v2028_v41 = vmul.f32 %v2027_v36, %v3670_v2 }
 0x607   : > { %v2029_v42 = vsel %vm1420_vm2, %v2028_v41, -inf }
 0x609   : > { %v1585_v33 = vpop.f32.mrf.mxu1 }
 0x60a   : > { %1589 = vst.msk [vmem:[#allocation2] sm:$0xff] %vm1420_vm2, %v1585_v33 }
 0x60b   : > { %v2668_v34 = vpop.f32.mrf.mxu1 }
 0x60d   : > { %v1664_v35 = vpop.f32.mrf.mxu1 }
 0x60e   : > { %v1668_v37 = vmul.f32 0.17677669, %v1664_v35 }
 0x60f   : > { %v2673_v38 = vpop.f32.mrf.mxu1 }
 0x610   : > { %v1669_v39 = vmul.f32 %v1668_v37, %v3670_v2 }
 0x612   : > { %v1670_v40 = vsel %vm1420_vm2, %v1669_v39, -inf }
 0x613   : > { %1671 = vmax.xlane.f32.xlu1 %v1670_v40 }
 0x617   : > { %1688 = vrot.lane.b32.xlu0 %v3664_v62, %s3163_s16  ;;  %2030 = vmax.xlane.f32.xlu1 %v2029_v42 }
 0x68a   : > { %v1852_v43 = vpop.xlane.xlu0 %1851 }
 0x68b   : > { %v1853_v44 = vsub.f32 %v1849_v29, %v1852_v43 }
 0x68d   : > { %v1854_v45 = vmul.f32 1.442695, %v1853_v44 }
 0x68e   : > { %v1689_v46 = vpop.permute.xlu0 %1688 }
 0x68f   : > { %2834 = vpow2.f32 %v1854_v45  ;;  %2675 = vmatpush3.msra.mxu1 %v1689_v46  ;;  %v2488_v46 = vld [vmem:[%s3861_s26] ss:$0 sm:$0xff] }
 0x690   : > { %2684 = vmatprep.subr.mxu1 %v3160_v0 }
 0x69c   : > { %v2835_v47 = vpop.eup %2834  ;;  %v1672_v48 = vpop.xlane.xlu1 %1671 }
 0x69d   : > { %v1673_v49 = vsub.f32 %v1669_v39, %v1672_v48  ;;  %v1856_v50 = vmul.f32 %v2835_v47, %v3670_v2  ;;  %v2489_v48 = vld [vmem:[%s3862_s14] ss:$0 sm:$0xff] }
 0x69f   : > { %v1674_v51 = vmul.f32 1.442695, %v1673_v49  ;;  %v1857_v52 = vsel %vm1420_vm2, %v1856_v50, 0.0 }
 0x6a0   : > { %1858 = vadd.xlane.f32.xlu1 %v1857_v52  ;;  %v2031_v53 = vpop.xlane.xlu1 %2030 }
 0x6a1   : > { %2836 = vpow2.f32 %v1674_v51  ;;  %v2032_v54 = vsub.f32 %v2028_v41, %v2031_v53 }
 0x6a3   : > { %v2033_v55 = vmul.f32 1.442695, %v2032_v54 }
 0x6a5   : > { %2838 = vpow2.f32 %v2033_v55 }
 0x6ae   : > { %v2837_v56 = vpop.eup %2836 }
 0x6af   : > { %v1676_v57 = vmul.f32 %v2837_v56, %v3670_v2 }
 0x6b1   : > { %v1677_v58 = vsel %vm1420_vm2, %v1676_v57, 0.0 }
 0x6b2   : > { %v2839_v59 = vpop.eup %2838  ;;  %1678 = vadd.xlane.f32.xlu1 %v1677_v58 }
 0x6b3   : > { %v2035_v60 = vmul.f32 %v2839_v59, %v3670_v2 }
 0x6b5   : > { %v2036_v61 = vsel %vm1420_vm2, %v2035_v60, 0.0 }
 0x6b6   : > { %2037 = vadd.xlane.f32.xlu1 %v2036_v61 }
 0x6c7   : > { %1867 = vrot.lane.b32.xlu1 %v3664_v62, %s3165_s29  ;;  %s3863_s29 = sld [smem:[#allocation39_spill]] }
 0x6cb   : > { %2046 = vrot.lane.b32.xlu1 %v3664_v62, %s3164_s18 }
 0x729   : > { %v1859_v63 = vpop.xlane.xlu1 %1858 }
 0x72a   : > { %vm1860_vm4 = vcmp.eq.f32.partialorder %v1859_v63, 0.0 }
 0x72b   : > { %v2480_v1 = vsel %vm1860_vm4, 1.0, %v3160_v0 }
 0x72c   : > { %v1863_v4 = vadd.f32 %v2480_v1, %v1859_v63 }
 0x72e   : > { %v1864_v7 = vadd.f32 1e-20, %v1863_v4 }
 0x73b   : > { %v1679_v3 = vpop.xlane.xlu1 %1678 }
 0x73c   : > { %vm1680_vm5 = vcmp.eq.f32.partialorder %v1679_v3, 0.0 }
 0x73d   : > { %v2476_v5 = vsel %vm1680_vm5, 1.0, %v3160_v0 }
 0x73e   : > { %v1683_v6 = vadd.f32 %v2476_v5, %v1679_v3 }
 0x73f   : > { %v2038_v2 = vpop.xlane.xlu1 %2037 }
 0x740   : > { %v1684_v8 = vadd.f32 1e-20, %v1683_v6  ;;  %vm2039_vm6 = vcmp.eq.f32.partialorder %v2038_v2, 0.0 }
 0x741   : > { %v2484_v9 = vsel %vm2039_vm6, 1.0, %v3160_v0 }
 0x742   : > { %2840 = vrcp.f32 %v1684_v8  ;;  %v2042_v10 = vadd.f32 %v2484_v9, %v2038_v2 }
 0x743   : > { %2842 = vrcp.f32 %v1864_v7  ;;  %v1868_v12 = vpop.permute.xlu1 %1867 }
 0x744   : > { %v2043_v62 = vadd.f32 1e-20, %v2042_v10 }
 0x746   : > { %2844 = vrcp.f32 %v2043_v62 }
 0x747   : > { %v2047_v17 = vpop.permute.xlu1 %2046 }
 0x74f   : > { %v2841_v11 = vpop.eup %2840 }
 0x750   : > { %v1686_v13 = vmul.f32 %v2841_v11, %v1676_v57  ;;  %v2843_v14 = vpop.eup %2842 }
 0x751   : > { %v1866_v15 = vmul.f32 %v2843_v14, %v1856_v50 }
 0x752   : > { %2677 = vmatmul.mubr.msk.f32.vlgmr.msra.gmra.mxu1 %vm1420_vm2, %v1686_v13 }
 0x753   : > { %2685 = vmatpush3.msra.mxu1 %v1868_v12  ;;  %2686 = vmatprep.mubr.msk.f32.mxu1 %vm3161_vm0, %v3160_v0  ;;  %v2845_v16 = vpop.eup %2844 }
 0x754   : > { %2694 = vmatprep.subr.mxu1 %v3160_v0  ;;  %v2045_v18 = vmul.f32 %v2845_v16, %v2035_v60 }
 0x756   : > { %2687 = vmatmul.mubr.msk.f32.vlgmr.msra.gmra.mxu1 %vm1420_vm2, %v1866_v15 }
 0x757   : > { %2695 = vmatpush3.msra.mxu1 %v2047_v17  ;;  %2696 = vmatprep.mubr.msk.f32.mxu1 %vm3161_vm0, %v3160_v0  ;;  %v2486_v0 = vld [vmem:[%s3859_s6] ss:$0 sm:$0xff] }
 0x75a   : > { %2697 = vmatmul.mubr.msk.f32.vlgmr.msra.gmra.mxu1 %vm1420_vm2, %v2045_v18 }
 0x812   : > { %v1760_v22 = vpop.f32.mrf.mxu1 }
 0x813   : > { %1765 = vrot.lane.b32.xlu0 %v1760_v22, %s3166_s27  ;;  %s2249_s27 = scalar_lea.hbm %s3863_s29, %s2491_s23 }
 0x814   : > { %v2678_v24 = vpop.f32.mrf.mxu1 }
 0x816   : > { %v1939_v25 = vpop.f32.mrf.mxu1 }
 0x817   : > { %1944 = vrot.lane.b32.xlu1 %v1939_v25, %s3167_s5  ;;  %s2238_s5 = scalar_lea.sflag [#allocation5], %s3492_s13 }
 0x818   : > { %v2688_v26 = vpop.f32.mrf.mxu1 }
 0x81a   : > { %v2118_v27 = vpop.f32.mrf.mxu1 }
 0x81b   : > { %2123 = vrot.lane.b32.xlu0 %v2118_v27, %s3168_s3  ;;  %s3064_s3 = scalar_lea.vmem %s2252_s10, 128 }
 0x81c   : > { %v2698_v28 = vpop.f32.mrf.mxu1  ;;  %p3065_p6 = scmp.ne.s32.totalorder %s2252_s10, %s3064_s3  ;;  %p3072_p0 = scmp.lt.s32.totalorder %s3070_s22, %s3064_s3 }
 0x81e   : > { %p3066_p11 = pnand %p3065_p6, %p3864_p8  ;;  %p3073_p13 = por %p3072_p0, %p3071_p2 }
 0x820   : > { %p3067_p7 = pneg %p3066_p11 }
 0x822   : > { %p3074_p9 = pnand %p3073_p13, %p3067_p7 }
 0x885   : > { %v1766_v29 = vpop.permute.xlu0 %1765 }
 0x886   : > { %1769 = vst.msk [vmem:[#allocation2] sm:$0xff] %vm1768_vm7, %v1766_v29 }
 0x889   : > { %v1945_v30 = vpop.permute.xlu1 %1944 }
 0x88a   : > { %1948 = vst.msk [vmem:[#allocation2] sm:$0xff] %vm1947_vm8, %v1945_v30 }
 0x88d   : > { %v2124_v31 = vpop.permute.xlu0 %2123 }
 0x88e   : > { %2127 = vst.msk [vmem:[#allocation2] sm:$0xff] %vm2126_vm9, %v2124_v31 }
 0x895   : > { %v2128_v32 = vld [vmem:[#allocation2] sm:$0xff] }
 0x896   : > { %2708 = vmatmul.mubr.msk.f32.vlgmr.msra.gmra.mxu0 %vm720_vm1, %v2128_v32 }
 0x956   : > { %v2204_v33 = vpop.f32.mrf.mxu0 }
 0x957   : > { %v2205_v34 = vadd.f32 %v2486_v0, %v2204_v33 }
 0x958   : > { %v2709_v35 = vpop.f32.mrf.mxu0 }
 0x959   : > { %v2208_v36 = vsel %vm720_vm1, %v2205_v34, 0.0 }
 0x95a   : > { %2209 = vadd.xlane.f32.xlu1 %v2208_v36 }
 0x9e3   : > { %v2210_v37 = vpop.xlane.xlu1 %2209 }
 0x9e4   : > { %v2212_v38 = vmul.f32 0.03125, %v2210_v37 }
 0x9e6   : > { %v2213_v39 = vsub.f32 %v2205_v34, %v2212_v38 }
 0x9e8   : > { %v2214_v40 = vmul.f32 %v2213_v39, %v2213_v39 }
 0x9ea   : > { %v2215_v41 = vsel %vm720_vm1, %v2214_v40, 0.0 }
 0x9eb   : > { %2216 = vadd.xlane.f32.xlu0 %v2215_v41 }
 0xa74   : > { %v2217_v42 = vpop.xlane.xlu0 %2216 }
 0xa75   : > { %v2218_v43 = vmul.f32 0.03125, %v2217_v42 }
 0xa77   : > { %v2219_v44 = vadd.f32 1e-05, %v2218_v43 }
 0xa79   : > { %2846 = vrsqrt.f32 %v2219_v44 }
 0xa86   : > { %v2847_v45 = vpop.eup %2846 }
 0xa87   : > { %v2221_v47 = vmul.f32 %v2847_v45, %v2213_v39 }
 0xa89   : > { %v2228_v49 = vmul.f32 %v2488_v46, %v2221_v47 }
 0xa8b   : > { %v2235_v50 = vadd.f32 %v2489_v48, %v2228_v49 }
 0xa8d   : > { %2236 = vst.msk [vmem:[%s685_s24] sm:$0xff] %vm720_vm1, %v2235_v50 }
 0xa8e   : > { %3077 = shalt.err (!%p3074_p9)
}
 0xa8f   : > { %s3078_s20 = scalar_lea.hbm %s2249_s27, 128  ;;  %s3082_s30 = scalar_lea.hbm %s3863_s29, 256 }
 0xa90   : > { %p3079_p1 = scmp.ne.s32.totalorder %s2249_s27, %s3078_s20  ;;  %p3083_p5 = scmp.lt.s32.totalorder %s2249_s27, %s3863_s29 }
 0xa91   : > { %p3084_p3 = scmp.lt.s32.totalorder %s3082_s30, %s3078_s20 }
 0xa92   : > { %p3080_p12 = pnand %p3079_p1, %p3864_p8 }
 0xa93   : > { %p3085_p4 = por %p3084_p3, %p3083_p5 }
 0xa94   : > { %p3081_p10 = pneg %p3080_p12 }
 0xa96   : > { %p3086_p6 = pnand %p3085_p4, %p3081_p10 }
 0xa98   : > { %3089 = shalt.err (!%p3086_p6)
}
 0xa99   : > { %2734 = dma.vmem_to_hbm [thread:$0]  (%p3864_p8), %s2252_s10, 128, %s2249_s27, %s2238_s5  }
 0xa9a PF: > { %s3865_s28 = sld [smem:[#allocation25_spill]]  ;;  %p3868_p7 = scmp.ge.s32.totalorder %s3148_s21, 2 }
 0xa9b   : > { %s3866_s9 = sld [smem:[#allocation27_spill]] }
 0xaa0   : > { %s2263_s14 = sand.u32 1, %s3865_s28  }
 0xaa1   : > { %p3867_p11 = scmp.ne.s32.totalorder %s3866_s9, 0  ;;  %s2264_s23 = scalar_lea.sflag [#allocation5], %s2263_s14 }
 0xaa3   : > { %p2763_p2 = pnand %p3868_p7, %p3867_p11 }
 0xaa5   : > { %p2764_p0 = pneg %p2763_p2 }
 0xaa7   : > { %3131 = dma.done.wait (%p2764_p0), %s2264_s23, 128  }
 0xaa8   : > { %3133 = vsyncadd (%p2764_p0), %s2264_s23, 4294967168  ;;  %s3869_s21 = sld [smem:[#allocation28_spill]]  ;;  %s3872_s18 = smov %s3140_s19 }
 0xaa9   : > { %s3870_s24 = sld [smem:[#allocation26_spill]] }
 0xaaa   : > { %s3871_s20 = sld [smem:[#allocation30_spill]] }
 0xaae   : > { %p36_p13 = scmp.ge.s32.totalorder %s3869_s21, 4  }
 0xaaf   : > { %s3873_s19 = smov %s3870_s24 }
 0xab0   :  { %38 = sbr.rel (!%p36_p13) target bundleno = 21 (0x15), region = 181 }
 0xab5   :  { %2269 = vsyncpa [#allocation4], 1 }
 0xab6   :  { %2271 = vsyncpa [#allocation4 + $0x1], 1 }
 0xab7   :  { %2272 = vsyncpa [#allocation7], 1 }
 0xab8   :  { %2274 = vsyncpa [#allocation7 + $0x1], 1 }
 0xab9   :  { %2275 = vsyncpa [#allocation10], 1 }
 0xaba   :  { %2277 = vsyncpa [#allocation10 + $0x1], 1 }
 0xabb   :  { %2278 = vsyncpa [#allocation13], 1 }
 0xabc   :  { %2279 = vsyncpa [#allocation16], 1 }
 0xabd   :  { %2280 = vsyncpa [#allocation5], 1 }
 0xabe   :  { %2282 = vsyncpa [#allocation5 + $0x1], 1 }

</bundles_post_ra>
